<compile_context>
chip_gen: v7x
topology: tpu7x:2x2x1
jax: 0.10.0
libtpu: 0.0.40
codegen_flags: <defaults>
</compile_context>

<pallas_src>
import math

import jax
import jax.numpy as jnp
from jax.experimental import pallas as pl
from jax.experimental.pallas import tpu as pltpu

# ---------------- scaled-down config (bert-base uses H=768, L=12, NH=12) ----
B = 2            # batch
S = 16           # sequence length
BS = B * S       # batch folded into the matmul M dimension
H = 128          # hidden size
NH = 2           # attention heads
DH = H // NH     # head dim
I = 256          # FFN intermediate size
L = 2            # transformer layers
VOCAB = 100
TYPE_VOCAB = 2
MAX_POS = 32
NUM_LABELS = 2
ENT_NUM = 3      # entities injected at token positions 1..ENT_NUM
ENT_VOCAB = 50
GRAPH_DIM = 32   # GraphEncoder internal embedding dim
LN_EPS = 1e-12
LANE = 128       # lane width used for padding the tiny classifier dim
SCALE = 1.0 / math.sqrt(DH)
NEG = -10000.0   # HF-style additive mask value


# ---------------- in-kernel helpers ------------------------------------------
def _gelu(x):
    c = math.sqrt(2.0 / math.pi)
    return 0.5 * x * (1.0 + jnp.tanh(c * (x + 0.044715 * x * x * x)))


def _layernorm(x, g, b):
    mu = jnp.mean(x, axis=-1, keepdims=True)
    var = jnp.mean(jnp.square(x - mu), axis=-1, keepdims=True)
    return (x - mu) * jax.lax.rsqrt(var + LN_EPS) * g + b


def _dot(a, b):
    # bf16 MXU operands, f32 accumulation.
    return jnp.dot(a.astype(jnp.bfloat16), b.astype(jnp.bfloat16),
                   preferred_element_type=jnp.float32)


# ---------------- the single fused encoder kernel (grid-less) ----------------
def fused_encoder_kernel(emb_ref, bias_ref, emb_ln_g_ref, emb_ln_b_ref,
                         wqkv_ref, bqkv_ref, wo_ref, bo_ref,
                         ln1_g_ref, ln1_b_ref, w1_ref, b1_ref,
                         w2_ref, b2_ref, ln2_g_ref, ln2_b_ref,
                         cls_w_ref, cls_b_ref, out_ref):
    # Whole batch at once: emb_ref is (B*S, H); bias_ref is the precomputed
    # (B*S, B*S) block-diagonal + key-padding additive attention bias.
    x = _layernorm(emb_ref[...], emb_ln_g_ref[...], emb_ln_b_ref[...])   # (BS, H) f32
    bias = bias_ref[...]                                                  # (BS, BS) f32

    # L=2: static unroll is fine (per review; switch to lax.fori_loop if L grows).
    for layer in range(L):
        # fused Q|K|V projection: one (BS,H) x (H,3H) matmul
        qkv = _dot(x, wqkv_ref[layer]) + bqkv_ref[layer]                  # (BS, 3H) f32
        qkv_b = qkv.astype(jnp.bfloat16)                                  # single cast
        wo_l = wo_ref[layer]                                              # (H, H) bf16

        # per-head attention; output projection accumulated per head
        # (no cross-lane concat of the heads).
        attn = jnp.zeros((BS, H), jnp.float32)
        for h in range(NH):
            qh = qkv_b[:, h * DH:(h + 1) * DH]                            # (BS, DH)
            kh = qkv_b[:, H + h * DH:H + (h + 1) * DH]                    # (BS, DH)
            vh = qkv_b[:, 2 * H + h * DH:2 * H + (h + 1) * DH]            # (BS, DH)
            s = jax.lax.dot_general(qh, kh, (((1,), (1,)), ((), ())),
                                    preferred_element_type=jnp.float32)   # (BS, BS)
            s = s * SCALE + bias
            s = s - jnp.max(s, axis=-1, keepdims=True)
            p = jnp.exp(s)
            p = p * pl.reciprocal(jnp.sum(p, axis=-1, keepdims=True))
            head = jnp.dot(p.astype(jnp.bfloat16), vh,
                           preferred_element_type=jnp.float32)            # (BS, DH)
            attn = attn + jnp.dot(head.astype(jnp.bfloat16),
                                  wo_l[h * DH:(h + 1) * DH, :],
                                  preferred_element_type=jnp.float32)     # (BS, H)
        attn = attn + bo_ref[layer]
        x = _layernorm(attn + x, ln1_g_ref[layer], ln1_b_ref[layer])

        ffn = _gelu(_dot(x, w1_ref[layer]) + b1_ref[layer])
        ffn = _dot(ffn, w2_ref[layer]) + b2_ref[layer]
        x = _layernorm(ffn + x, ln2_g_ref[layer], ln2_b_ref[layer])

    # classifier head on lane-padded weights -> lane-dense (BS, LANE) store
    out_ref[...] = (_dot(x, cls_w_ref[...]) + cls_b_ref[...]).astype(out_ref.dtype)


def fused_encoder(emb2d, bias, p):
    # No grid: single step, every operand is one full-array VMEM block, no
    # pipelining machinery and no double-buffered weight copies.
    vmem = lambda: pl.BlockSpec(memory_space=pltpu.MemorySpace.VMEM)
    n_inputs = 18
    return pl.pallas_call(
        fused_encoder_kernel,
        out_shape=jax.ShapeDtypeStruct((BS, LANE), jnp.float32),
        in_specs=[vmem() for _ in range(n_inputs)],
        out_specs=vmem(),
    )(emb2d, bias, p["emb_ln_g"], p["emb_ln_b"],
      p["wqkv"], p["bqkv"], p["wo"], p["bo"],
      p["ln1_g"], p["ln1_b"], p["w1"], p["b1"],
      p["w2"], p["b2"], p["ln2_g"], p["ln2_b"],
      p["cls_w"], p["cls_b"])


# ---------------- model forward (glue in XLA, hot path in one Pallas call) ---
def train_model_forward(params, input_ids, attention_mask, token_type_ids,
                        labels, ent_id):
    bsz = input_ids.shape[0]

    # token embedding lookup (gather: XLA glue)
    input_embed = jnp.take(params["word_emb"], input_ids, axis=0)          # (B, S, H)

    # TODO(synk): GraphEncoder is not defined in the reference source; modeled
    # as entity-embedding lookup + dense tanh projection (tiny -> plain XLA).
    ge = jnp.take(params["ent_emb"], ent_id.reshape(-1), axis=0)           # (B*ENT, GD)
    ent_embed = jnp.tanh(ge @ params["ent_proj_w"] + params["ent_proj_b"])
    ent_embed = ent_embed.reshape(bsz, -1, H)

    # input_embed[:, 1:ent_num+1] = ent_embed
    input_embed = jax.lax.dynamic_update_slice(input_embed, ent_embed, (0, 1, 0))

    # BERT embeddings: word(+entity) + position + token_type (LayerNorm in-kernel)
    pos_embed = params["pos_emb"][:S]                                      # (S, H)
    type_embed = jnp.take(params["type_emb"], token_type_ids, axis=0)      # (B, S, H)
    emb2d = (input_embed + pos_embed[None, :, :] + type_embed).reshape(BS, H)

    # Additive attention bias on the batch-folded (BS, BS) score matrix:
    #   key-padding ((1-mask)*-10000, as in HF) + block-diagonal batch
    #   structure (cross-batch attention fully masked).  Built once in XLA,
    #   passed pre-shaped so the kernel does no mask reshaping/slicing.
    key_bias = ((1.0 - attention_mask.astype(jnp.float32)) * NEG).reshape(BS)
    batch_ids = jnp.repeat(jnp.arange(B), S)                               # (BS,)
    same_batch = batch_ids[:, None] == batch_ids[None, :]                  # (BS, BS)
    bias = jnp.where(same_batch, key_bias[None, :], NEG)                   # (BS, BS)

    logits_pad = fused_encoder(emb2d, bias, params)                        # (BS, LANE)
    logits = logits_pad[:, :NUM_LABELS]                                    # (BS, 2)

    # cross-entropy over active (attention_mask == 1) tokens, as in HF
    logp = jax.nn.log_softmax(logits, axis=-1)
    lbl = labels.reshape(-1)
    nll = -jnp.take_along_axis(logp, lbl[:, None], axis=-1)[:, 0]          # (BS,)
    active = attention_mask.reshape(-1).astype(jnp.float32)
    loss = jnp.sum(nll * active) / jnp.maximum(jnp.sum(active), 1.0)

    return loss, logits.reshape(B, S, NUM_LABELS)


# ---------------- deterministic parameter init (kernel-ready layout) ---------
def init_params(key):
    keys = iter(jax.random.split(key, 24))

    def nrm(shape, std=0.02):
        return jax.random.normal(next(keys), shape, jnp.float32) * std

    # classifier padded lane-dense once at init (hoisted out of the forward)
    cls_w = nrm((H, NUM_LABELS))
    cls_w_pad = jnp.zeros((H, LANE), jnp.float32).at[:, :NUM_LABELS].set(cls_w)

    params = {
        # embedding tables (used by XLA-side gathers)
        "word_emb": nrm((VOCAB, H)),
        "pos_emb": nrm((MAX_POS, H)),
        "type_emb": nrm((TYPE_VOCAB, H)),
        "emb_ln_g": jnp.ones((1, H), jnp.float32),
        "emb_ln_b": jnp.zeros((1, H), jnp.float32),
        # GraphEncoder (modeled): entity table + tanh projection (XLA side)
        "ent_emb": nrm((ENT_VOCAB, GRAPH_DIM)),
        "ent_proj_w": nrm((GRAPH_DIM, H)),
        "ent_proj_b": jnp.zeros((H,), jnp.float32),
        # transformer layers, stacked along a leading layer axis;
        # matmul weights stored bf16 (MXU operands), biases/LN params f32
        "wqkv": nrm((L, H, 3 * H)).astype(jnp.bfloat16),
        "bqkv": jnp.zeros((L, 1, 3 * H), jnp.float32),
        "wo": nrm((L, H, H)).astype(jnp.bfloat16),
        "bo": jnp.zeros((L, 1, H), jnp.float32),
        "ln1_g": jnp.ones((L, 1, H), jnp.float32),
        "ln1_b": jnp.zeros((L, 1, H), jnp.float32),
        "w1": nrm((L, H, I)).astype(jnp.bfloat16),
        "b1": jnp.zeros((L, 1, I), jnp.float32),
        "w2": nrm((L, I, H)).astype(jnp.bfloat16),
        "b2": jnp.zeros((L, 1, H), jnp.float32),
        "ln2_g": jnp.ones((L, 1, H), jnp.float32),
        "ln2_b": jnp.zeros((L, 1, H), jnp.float32),
        # classifier head (lane-padded)
        "cls_w": cls_w_pad.astype(jnp.bfloat16),
        "cls_b": jnp.zeros((1, LANE), jnp.float32),
    }
    return params


if __name__ == "__main__":
    key = jax.random.PRNGKey(0)
    k_ids, k_lbl, k_ent, k_par = jax.random.split(key, 4)

    input_ids = jax.random.randint(k_ids, (B, S), 0, VOCAB, dtype=jnp.int32)
    attention_mask = jnp.ones((B, S), jnp.int32).at[:, S - 2:].set(0)  # 2 pad tokens
    token_type_ids = jnp.zeros((B, S), jnp.int32)
    labels = jax.random.randint(k_lbl, (B, S), 0, NUM_LABELS, dtype=jnp.int32)
    ent_id = jax.random.randint(k_ent, (B, ENT_NUM), 0, ENT_VOCAB, dtype=jnp.int32)

    params = init_params(k_par)

    fwd = jax.jit(train_model_forward)
    loss, logits = fwd(params, input_ids, attention_mask, token_type_ids,
                       labels, ent_id)
    jax.block_until_ready((loss, logits))

    assert logits.shape == (B, S, NUM_LABELS)
    assert jnp.isfinite(loss)
    print("KERNEL_OK")
</pallas_src>

<mosaic_0001>
module attributes {stable_mosaic.version = 11 : i64} {
  func.func @fused_encoder_kernel(%arg0: memref<32x128xf32, #tpu.memory_space<vmem>>, %arg1: memref<32x32xf32, #tpu.memory_space<vmem>>, %arg2: memref<1x128xf32, #tpu.memory_space<vmem>>, %arg3: memref<1x128xf32, #tpu.memory_space<vmem>>, %arg4: memref<2x128x384xbf16, #tpu.memory_space<vmem>>, %arg5: memref<2x1x384xf32, #tpu.memory_space<vmem>>, %arg6: memref<2x128x128xbf16, #tpu.memory_space<vmem>>, %arg7: memref<2x1x128xf32, #tpu.memory_space<vmem>>, %arg8: memref<2x1x128xf32, #tpu.memory_space<vmem>>, %arg9: memref<2x1x128xf32, #tpu.memory_space<vmem>>, %arg10: memref<2x128x256xbf16, #tpu.memory_space<vmem>>, %arg11: memref<2x1x256xf32, #tpu.memory_space<vmem>>, %arg12: memref<2x256x128xbf16, #tpu.memory_space<vmem>>, %arg13: memref<2x1x128xf32, #tpu.memory_space<vmem>>, %arg14: memref<2x1x128xf32, #tpu.memory_space<vmem>>, %arg15: memref<2x1x128xf32, #tpu.memory_space<vmem>>, %arg16: memref<128x128xbf16, #tpu.memory_space<vmem>>, %arg17: memref<1x128xf32, #tpu.memory_space<vmem>>, %arg18: memref<32x128xf32, #tpu.memory_space<vmem>>) attributes {dimension_semantics = [], scalar_prefetch = 0 : i64, scratch_operands = 0 : i64, tpu.core_type = #tpu.core_type<tc>} {
    %c0 = arith.constant 0 : index
    %c0_0 = arith.constant 0 : index
    %0 = vector.load %arg0[%c0, %c0_0] : memref<32x128xf32, #tpu.memory_space<vmem>>, vector<32x128xf32>
    %c0_1 = arith.constant 0 : index
    %c0_2 = arith.constant 0 : index
    %1 = vector.load %arg2[%c0_1, %c0_2] : memref<1x128xf32, #tpu.memory_space<vmem>>, vector<1x128xf32>
    %c0_3 = arith.constant 0 : index
    %c0_4 = arith.constant 0 : index
    %2 = vector.load %arg3[%c0_3, %c0_4] : memref<1x128xf32, #tpu.memory_space<vmem>>, vector<1x128xf32>
    %cst = arith.constant dense<0.000000e+00> : vector<32xf32>
    %3 = vector.multi_reduction <add>, %0, %cst [1] : vector<32x128xf32> to vector<32xf32>
    %4 = vector.shape_cast %3 : vector<32xf32> to vector<32x1xf32>
    %cst_5 = arith.constant 1.280000e+02 : f32
    %5 = vector.broadcast %cst_5 : f32 to vector<32x1xf32>
    %6 = arith.divf %4, %5 : vector<32x1xf32>
    %7 = vector.broadcast %6 : vector<32x1xf32> to vector<32x128xf32>
    %8 = arith.subf %0, %7 : vector<32x128xf32>
    %9 = arith.mulf %8, %8 : vector<32x128xf32>
    %cst_6 = arith.constant dense<0.000000e+00> : vector<32xf32>
    %10 = vector.multi_reduction <add>, %9, %cst_6 [1] : vector<32x128xf32> to vector<32xf32>
    %11 = vector.shape_cast %10 : vector<32xf32> to vector<32x1xf32>
    %cst_7 = arith.constant 1.280000e+02 : f32
    %12 = vector.broadcast %cst_7 : f32 to vector<32x1xf32>
    %13 = arith.divf %11, %12 : vector<32x1xf32>
    %14 = vector.broadcast %6 : vector<32x1xf32> to vector<32x128xf32>
    %15 = arith.subf %0, %14 : vector<32x128xf32>
    %cst_8 = arith.constant 9.99999996E-13 : f32
    %16 = vector.broadcast %cst_8 : f32 to vector<32x1xf32>
    %17 = arith.addf %13, %16 : vector<32x1xf32>
    %18 = math.rsqrt %17 : vector<32x1xf32>
    %19 = vector.broadcast %18 : vector<32x1xf32> to vector<32x128xf32>
    %20 = arith.mulf %15, %19 : vector<32x128xf32>
    %21 = vector.broadcast %1 : vector<1x128xf32> to vector<32x128xf32>
    %22 = arith.mulf %20, %21 : vector<32x128xf32>
    %23 = vector.broadcast %2 : vector<1x128xf32> to vector<32x128xf32>
    %24 = arith.addf %22, %23 : vector<32x128xf32>
    %c0_9 = arith.constant 0 : index
    %c0_10 = arith.constant 0 : index
    %25 = vector.load %arg1[%c0_9, %c0_10] : memref<32x32xf32, #tpu.memory_space<vmem>>, vector<32x32xf32>
    %c0_11 = arith.constant 0 : index
    %c0_12 = arith.constant 0 : index
    %c0_13 = arith.constant 0 : index
    %26 = vector.load %arg4[%c0_11, %c0_12, %c0_13] : memref<2x128x384xbf16, #tpu.memory_space<vmem>>, vector<1x128x384xbf16>
    %27 = vector.shape_cast %26 : vector<1x128x384xbf16> to vector<128x384xbf16>
    %28 = arith.truncf %24 : vector<32x128xf32> to vector<32x128xbf16>
    %cst_14 = arith.constant dense<0.000000e+00> : vector<32x384xf32>
    %29 = tpu.matmul %28, %27, %cst_14 {dimension_numbers = #tpu.dot_dimension_numbers<[1], [0], [0], [1], [0, 0, 1, 1], [], []>} : vector<32x128xbf16>, vector<128x384xbf16>, vector<32x384xf32> -> vector<32x384xf32>
    %c0_15 = arith.constant 0 : index
    %c0_16 = arith.constant 0 : index
    %c0_17 = arith.constant 0 : index
    %30 = vector.load %arg5[%c0_15, %c0_16, %c0_17] : memref<2x1x384xf32, #tpu.memory_space<vmem>>, vector<1x1x384xf32>
    %31 = vector.shape_cast %30 : vector<1x1x384xf32> to vector<1x384xf32>
    %32 = vector.broadcast %31 : vector<1x384xf32> to vector<32x384xf32>
    %33 = arith.addf %29, %32 : vector<32x384xf32>
    %34 = arith.truncf %33 : vector<32x384xf32> to vector<32x384xbf16>
    %c0_18 = arith.constant 0 : index
    %c0_19 = arith.constant 0 : index
    %c0_20 = arith.constant 0 : index
    %35 = vector.load %arg6[%c0_18, %c0_19, %c0_20] : memref<2x128x128xbf16, #tpu.memory_space<vmem>>, vector<1x128x128xbf16>
    %36 = vector.shape_cast %35 : vector<1x128x128xbf16> to vector<128x128xbf16>
    %cst_21 = arith.constant 0.000000e+00 : f32
    %37 = vector.broadcast %cst_21 : f32 to vector<32x128xf32>
    %38 = vector.extract_strided_slice %34 {offsets = [0, 0], sizes = [32, 64], strides = [1, 1]} : vector<32x384xbf16> to vector<32x64xbf16>
    %39 = vector.extract_strided_slice %34 {offsets = [0, 128], sizes = [32, 64], strides = [1, 1]} : vector<32x384xbf16> to vector<32x64xbf16>
    %40 = vector.extract_strided_slice %34 {offsets = [0, 256], sizes = [32, 64], strides = [1, 1]} : vector<32x384xbf16> to vector<32x64xbf16>
    %cst_22 = arith.constant dense<0.000000e+00> : vector<32x32xf32>
    %41 = tpu.matmul %38, %39, %cst_22 {dimension_numbers = #tpu.dot_dimension_numbers<[1], [1], [0], [0], [0, 0, 1, 0], [], []>} : vector<32x64xbf16>, vector<32x64xbf16>, vector<32x32xf32> -> vector<32x32xf32>
    %cst_23 = arith.constant 1.250000e-01 : f32
    %42 = vector.broadcast %cst_23 : f32 to vector<32x32xf32>
    %43 = arith.mulf %41, %42 : vector<32x32xf32>
    %44 = arith.addf %43, %25 : vector<32x32xf32>
    %cst_24 = arith.constant dense<0xFF800000> : vector<32xf32>
    %45 = vector.multi_reduction <maximumf>, %44, %cst_24 [1] : vector<32x32xf32> to vector<32xf32>
    %46 = vector.shape_cast %45 : vector<32xf32> to vector<32x1xf32>
    %47 = vector.broadcast %46 : vector<32x1xf32> to vector<32x32xf32>
    %48 = arith.subf %44, %47 : vector<32x32xf32>
    %49 = math.exp %48 : vector<32x32xf32>
    %cst_25 = arith.constant dense<0.000000e+00> : vector<32xf32>
    %50 = vector.multi_reduction <add>, %49, %cst_25 [1] : vector<32x32xf32> to vector<32xf32>
    %51 = vector.shape_cast %50 : vector<32xf32> to vector<32x1xf32>
    %52 = tpu.reciprocal %51 : vector<32x1xf32> -> vector<32x1xf32>
    %53 = vector.broadcast %52 : vector<32x1xf32> to vector<32x32xf32>
    %54 = arith.mulf %49, %53 : vector<32x32xf32>
    %55 = arith.truncf %54 : vector<32x32xf32> to vector<32x32xbf16>
    %cst_26 = arith.constant dense<0.000000e+00> : vector<32x64xf32>
    %56 = tpu.matmul %55, %40, %cst_26 {dimension_numbers = #tpu.dot_dimension_numbers<[1], [0], [0], [1], [0, 0, 1, 1], [], []>} : vector<32x32xbf16>, vector<32x64xbf16>, vector<32x64xf32> -> vector<32x64xf32>
    %57 = arith.truncf %56 : vector<32x64xf32> to vector<32x64xbf16>
    %58 = vector.extract_strided_slice %36 {offsets = [0, 0], sizes = [64, 128], strides = [1, 1]} : vector<128x128xbf16> to vector<64x128xbf16>
    %cst_27 = arith.constant dense<0.000000e+00> : vector<32x128xf32>
    %59 = tpu.matmul %57, %58, %cst_27 {dimension_numbers = #tpu.dot_dimension_numbers<[1], [0], [0], [1], [0, 0, 1, 1], [], []>} : vector<32x64xbf16>, vector<64x128xbf16>, vector<32x128xf32> -> vector<32x128xf32>
    %60 = arith.addf %37, %59 : vector<32x128xf32>
    %61 = vector.extract_strided_slice %34 {offsets = [0, 64], sizes = [32, 64], strides = [1, 1]} : vector<32x384xbf16> to vector<32x64xbf16>
    %62 = vector.extract_strided_slice %34 {offsets = [0, 192], sizes = [32, 64], strides = [1, 1]} : vector<32x384xbf16> to vector<32x64xbf16>
    %63 = vector.extract_strided_slice %34 {offsets = [0, 320], sizes = [32, 64], strides = [1, 1]} : vector<32x384xbf16> to vector<32x64xbf16>
    %cst_28 = arith.constant dense<0.000000e+00> : vector<32x32xf32>
    %64 = tpu.matmul %61, %62, %cst_28 {dimension_numbers = #tpu.dot_dimension_numbers<[1], [1], [0], [0], [0, 0, 1, 0], [], []>} : vector<32x64xbf16>, vector<32x64xbf16>, vector<32x32xf32> -> vector<32x32xf32>
    %cst_29 = arith.constant 1.250000e-01 : f32
    %65 = vector.broadcast %cst_29 : f32 to vector<32x32xf32>
    %66 = arith.mulf %64, %65 : vector<32x32xf32>
    %67 = arith.addf %66, %25 : vector<32x32xf32>
    %cst_30 = arith.constant dense<0xFF800000> : vector<32xf32>
    %68 = vector.multi_reduction <maximumf>, %67, %cst_30 [1] : vector<32x32xf32> to vector<32xf32>
    %69 = vector.shape_cast %68 : vector<32xf32> to vector<32x1xf32>
    %70 = vector.broadcast %69 : vector<32x1xf32> to vector<32x32xf32>
    %71 = arith.subf %67, %70 : vector<32x32xf32>
    %72 = math.exp %71 : vector<32x32xf32>
    %cst_31 = arith.constant dense<0.000000e+00> : vector<32xf32>
    %73 = vector.multi_reduction <add>, %72, %cst_31 [1] : vector<32x32xf32> to vector<32xf32>
    %74 = vector.shape_cast %73 : vector<32xf32> to vector<32x1xf32>
    %75 = tpu.reciprocal %74 : vector<32x1xf32> -> vector<32x1xf32>
    %76 = vector.broadcast %75 : vector<32x1xf32> to vector<32x32xf32>
    %77 = arith.mulf %72, %76 : vector<32x32xf32>
    %78 = arith.truncf %77 : vector<32x32xf32> to vector<32x32xbf16>
    %cst_32 = arith.constant dense<0.000000e+00> : vector<32x64xf32>
    %79 = tpu.matmul %78, %63, %cst_32 {dimension_numbers = #tpu.dot_dimension_numbers<[1], [0], [0], [1], [0, 0, 1, 1], [], []>} : vector<32x32xbf16>, vector<32x64xbf16>, vector<32x64xf32> -> vector<32x64xf32>
    %80 = arith.truncf %79 : vector<32x64xf32> to vector<32x64xbf16>
    %81 = vector.extract_strided_slice %36 {offsets = [64, 0], sizes = [64, 128], strides = [1, 1]} : vector<128x128xbf16> to vector<64x128xbf16>
    %cst_33 = arith.constant dense<0.000000e+00> : vector<32x128xf32>
    %82 = tpu.matmul %80, %81, %cst_33 {dimension_numbers = #tpu.dot_dimension_numbers<[1], [0], [0], [1], [0, 0, 1, 1], [], []>} : vector<32x64xbf16>, vector<64x128xbf16>, vector<32x128xf32> -> vector<32x128xf32>
    %83 = arith.addf %60, %82 : vector<32x128xf32>
    %c0_34 = arith.constant 0 : index
    %c0_35 = arith.constant 0 : index
    %c0_36 = arith.constant 0 : index
    %84 = vector.load %arg7[%c0_34, %c0_35, %c0_36] : memref<2x1x128xf32, #tpu.memory_space<vmem>>, vector<1x1x128xf32>
    %85 = vector.shape_cast %84 : vector<1x1x128xf32> to vector<1x128xf32>
    %86 = vector.broadcast %85 : vector<1x128xf32> to vector<32x128xf32>
    %87 = arith.addf %83, %86 : vector<32x128xf32>
    %88 = arith.addf %87, %24 : vector<32x128xf32>
    %c0_37 = arith.constant 0 : index
    %c0_38 = arith.constant 0 : index
    %c0_39 = arith.constant 0 : index
    %89 = vector.load %arg8[%c0_37, %c0_38, %c0_39] : memref<2x1x128xf32, #tpu.memory_space<vmem>>, vector<1x1x128xf32>
    %90 = vector.shape_cast %89 : vector<1x1x128xf32> to vector<1x128xf32>
    %c0_40 = arith.constant 0 : index
    %c0_41 = arith.constant 0 : index
    %c0_42 = arith.constant 0 : index
    %91 = vector.load %arg9[%c0_40, %c0_41, %c0_42] : memref<2x1x128xf32, #tpu.memory_space<vmem>>, vector<1x1x128xf32>
    %92 = vector.shape_cast %91 : vector<1x1x128xf32> to vector<1x128xf32>
    %cst_43 = arith.constant dense<0.000000e+00> : vector<32xf32>
    %93 = vector.multi_reduction <add>, %88, %cst_43 [1] : vector<32x128xf32> to vector<32xf32>
    %94 = vector.shape_cast %93 : vector<32xf32> to vector<32x1xf32>
    %cst_44 = arith.constant 1.280000e+02 : f32
    %95 = vector.broadcast %cst_44 : f32 to vector<32x1xf32>
    %96 = arith.divf %94, %95 : vector<32x1xf32>
    %97 = vector.broadcast %96 : vector<32x1xf32> to vector<32x128xf32>
    %98 = arith.subf %88, %97 : vector<32x128xf32>
    %99 = arith.mulf %98, %98 : vector<32x128xf32>
    %cst_45 = arith.constant dense<0.000000e+00> : vector<32xf32>
    %100 = vector.multi_reduction <add>, %99, %cst_45 [1] : vector<32x128xf32> to vector<32xf32>
    %101 = vector.shape_cast %100 : vector<32xf32> to vector<32x1xf32>
    %cst_46 = arith.constant 1.280000e+02 : f32
    %102 = vector.broadcast %cst_46 : f32 to vector<32x1xf32>
    %103 = arith.divf %101, %102 : vector<32x1xf32>
    %104 = vector.broadcast %96 : vector<32x1xf32> to vector<32x128xf32>
    %105 = arith.subf %88, %104 : vector<32x128xf32>
    %cst_47 = arith.constant 9.99999996E-13 : f32
    %106 = vector.broadcast %cst_47 : f32 to vector<32x1xf32>
    %107 = arith.addf %103, %106 : vector<32x1xf32>
    %108 = math.rsqrt %107 : vector<32x1xf32>
    %109 = vector.broadcast %108 : vector<32x1xf32> to vector<32x128xf32>
    %110 = arith.mulf %105, %109 : vector<32x128xf32>
    %111 = vector.broadcast %90 : vector<1x128xf32> to vector<32x128xf32>
    %112 = arith.mulf %110, %111 : vector<32x128xf32>
    %113 = vector.broadcast %92 : vector<1x128xf32> to vector<32x128xf32>
    %114 = arith.addf %112, %113 : vector<32x128xf32>
    %c0_48 = arith.constant 0 : index
    %c0_49 = arith.constant 0 : index
    %c0_50 = arith.constant 0 : index
    %115 = vector.load %arg10[%c0_48, %c0_49, %c0_50] : memref<2x128x256xbf16, #tpu.memory_space<vmem>>, vector<1x128x256xbf16>
    %116 = vector.shape_cast %115 : vector<1x128x256xbf16> to vector<128x256xbf16>
    %117 = arith.truncf %114 : vector<32x128xf32> to vector<32x128xbf16>
    %cst_51 = arith.constant dense<0.000000e+00> : vector<32x256xf32>
    %118 = tpu.matmul %117, %116, %cst_51 {dimension_numbers = #tpu.dot_dimension_numbers<[1], [0], [0], [1], [0, 0, 1, 1], [], []>} : vector<32x128xbf16>, vector<128x256xbf16>, vector<32x256xf32> -> vector<32x256xf32>
    %c0_52 = arith.constant 0 : index
    %c0_53 = arith.constant 0 : index
    %c0_54 = arith.constant 0 : index
    %119 = vector.load %arg11[%c0_52, %c0_53, %c0_54] : memref<2x1x256xf32, #tpu.memory_space<vmem>>, vector<1x1x256xf32>
    %120 = vector.shape_cast %119 : vector<1x1x256xf32> to vector<1x256xf32>
    %121 = vector.broadcast %120 : vector<1x256xf32> to vector<32x256xf32>
    %122 = arith.addf %118, %121 : vector<32x256xf32>
    %cst_55 = arith.constant 5.000000e-01 : f32
    %123 = vector.broadcast %cst_55 : f32 to vector<32x256xf32>
    %124 = arith.mulf %123, %122 : vector<32x256xf32>
    %cst_56 = arith.constant 4.471500e-02 : f32
    %125 = vector.broadcast %cst_56 : f32 to vector<32x256xf32>
    %126 = arith.mulf %125, %122 : vector<32x256xf32>
    %127 = arith.mulf %126, %122 : vector<32x256xf32>
    %128 = arith.mulf %127, %122 : vector<32x256xf32>
    %129 = arith.addf %122, %128 : vector<32x256xf32>
    %cst_57 = arith.constant 0.797884583 : f32
    %130 = vector.broadcast %cst_57 : f32 to vector<32x256xf32>
    %131 = arith.mulf %130, %129 : vector<32x256xf32>
    %132 = math.tanh %131 : vector<32x256xf32>
    %cst_58 = arith.constant 1.000000e+00 : f32
    %133 = vector.broadcast %cst_58 : f32 to vector<32x256xf32>
    %134 = arith.addf %133, %132 : vector<32x256xf32>
    %135 = arith.mulf %124, %134 : vector<32x256xf32>
    %c0_59 = arith.constant 0 : index
    %c0_60 = arith.constant 0 : index
    %c0_61 = arith.constant 0 : index
    %136 = vector.load %arg12[%c0_59, %c0_60, %c0_61] : memref<2x256x128xbf16, #tpu.memory_space<vmem>>, vector<1x256x128xbf16>
    %137 = vector.shape_cast %136 : vector<1x256x128xbf16> to vector<256x128xbf16>
    %138 = arith.truncf %135 : vector<32x256xf32> to vector<32x256xbf16>
    %cst_62 = arith.constant dense<0.000000e+00> : vector<32x128xf32>
    %139 = tpu.matmul %138, %137, %cst_62 {dimension_numbers = #tpu.dot_dimension_numbers<[1], [0], [0], [1], [0, 0, 1, 1], [], []>} : vector<32x256xbf16>, vector<256x128xbf16>, vector<32x128xf32> -> vector<32x128xf32>
    %c0_63 = arith.constant 0 : index
    %c0_64 = arith.constant 0 : index
    %c0_65 = arith.constant 0 : index
    %140 = vector.load %arg13[%c0_63, %c0_64, %c0_65] : memref<2x1x128xf32, #tpu.memory_space<vmem>>, vector<1x1x128xf32>
    %141 = vector.shape_cast %140 : vector<1x1x128xf32> to vector<1x128xf32>
    %142 = vector.broadcast %141 : vector<1x128xf32> to vector<32x128xf32>
    %143 = arith.addf %139, %142 : vector<32x128xf32>
    %144 = arith.addf %143, %114 : vector<32x128xf32>
    %c0_66 = arith.constant 0 : index
    %c0_67 = arith.constant 0 : index
    %c0_68 = arith.constant 0 : index
    %145 = vector.load %arg14[%c0_66, %c0_67, %c0_68] : memref<2x1x128xf32, #tpu.memory_space<vmem>>, vector<1x1x128xf32>
    %146 = vector.shape_cast %145 : vector<1x1x128xf32> to vector<1x128xf32>
    %c0_69 = arith.constant 0 : index
    %c0_70 = arith.constant 0 : index
    %c0_71 = arith.constant 0 : index
    %147 = vector.load %arg15[%c0_69, %c0_70, %c0_71] : memref<2x1x128xf32, #tpu.memory_space<vmem>>, vector<1x1x128xf32>
    %148 = vector.shape_cast %147 : vector<1x1x128xf32> to vector<1x128xf32>
    %cst_72 = arith.constant dense<0.000000e+00> : vector<32xf32>
    %149 = vector.multi_reduction <add>, %144, %cst_72 [1] : vector<32x128xf32> to vector<32xf32>
    %150 = vector.shape_cast %149 : vector<32xf32> to vector<32x1xf32>
    %cst_73 = arith.constant 1.280000e+02 : f32
    %151 = vector.broadcast %cst_73 : f32 to vector<32x1xf32>
    %152 = arith.divf %150, %151 : vector<32x1xf32>
    %153 = vector.broadcast %152 : vector<32x1xf32> to vector<32x128xf32>
    %154 = arith.subf %144, %153 : vector<32x128xf32>
    %155 = arith.mulf %154, %154 : vector<32x128xf32>
    %cst_74 = arith.constant dense<0.000000e+00> : vector<32xf32>
    %156 = vector.multi_reduction <add>, %155, %cst_74 [1] : vector<32x128xf32> to vector<32xf32>
    %157 = vector.shape_cast %156 : vector<32xf32> to vector<32x1xf32>
    %cst_75 = arith.constant 1.280000e+02 : f32
    %158 = vector.broadcast %cst_75 : f32 to vector<32x1xf32>
    %159 = arith.divf %157, %158 : vector<32x1xf32>
    %160 = vector.broadcast %152 : vector<32x1xf32> to vector<32x128xf32>
    %161 = arith.subf %144, %160 : vector<32x128xf32>
    %cst_76 = arith.constant 9.99999996E-13 : f32
    %162 = vector.broadcast %cst_76 : f32 to vector<32x1xf32>
    %163 = arith.addf %159, %162 : vector<32x1xf32>
    %164 = math.rsqrt %163 : vector<32x1xf32>
    %165 = vector.broadcast %164 : vector<32x1xf32> to vector<32x128xf32>
    %166 = arith.mulf %161, %165 : vector<32x128xf32>
    %167 = vector.broadcast %146 : vector<1x128xf32> to vector<32x128xf32>
    %168 = arith.mulf %166, %167 : vector<32x128xf32>
    %169 = vector.broadcast %148 : vector<1x128xf32> to vector<32x128xf32>
    %170 = arith.addf %168, %169 : vector<32x128xf32>
    %c1 = arith.constant 1 : index
    %c0_77 = arith.constant 0 : index
    %c0_78 = arith.constant 0 : index
    %171 = vector.load %arg4[%c1, %c0_77, %c0_78] : memref<2x128x384xbf16, #tpu.memory_space<vmem>>, vector<1x128x384xbf16>
    %172 = vector.shape_cast %171 : vector<1x128x384xbf16> to vector<128x384xbf16>
    %173 = arith.truncf %170 : vector<32x128xf32> to vector<32x128xbf16>
    %cst_79 = arith.constant dense<0.000000e+00> : vector<32x384xf32>
    %174 = tpu.matmul %173, %172, %cst_79 {dimension_numbers = #tpu.dot_dimension_numbers<[1], [0], [0], [1], [0, 0, 1, 1], [], []>} : vector<32x128xbf16>, vector<128x384xbf16>, vector<32x384xf32> -> vector<32x384xf32>
    %c1_80 = arith.constant 1 : index
    %c0_81 = arith.constant 0 : index
    %c0_82 = arith.constant 0 : index
    %175 = vector.load %arg5[%c1_80, %c0_81, %c0_82] : memref<2x1x384xf32, #tpu.memory_space<vmem>>, vector<1x1x384xf32>
    %176 = vector.shape_cast %175 : vector<1x1x384xf32> to vector<1x384xf32>
    %177 = vector.broadcast %176 : vector<1x384xf32> to vector<32x384xf32>
    %178 = arith.addf %174, %177 : vector<32x384xf32>
    %179 = arith.truncf %178 : vector<32x384xf32> to vector<32x384xbf16>
    %c1_83 = arith.constant 1 : index
    %c0_84 = arith.constant 0 : index
    %c0_85 = arith.constant 0 : index
    %180 = vector.load %arg6[%c1_83, %c0_84, %c0_85] : memref<2x128x128xbf16, #tpu.memory_space<vmem>>, vector<1x128x128xbf16>
    %181 = vector.shape_cast %180 : vector<1x128x128xbf16> to vector<128x128xbf16>
    %cst_86 = arith.constant 0.000000e+00 : f32
    %182 = vector.broadcast %cst_86 : f32 to vector<32x128xf32>
    %183 = vector.extract_strided_slice %179 {offsets = [0, 0], sizes = [32, 64], strides = [1, 1]} : vector<32x384xbf16> to vector<32x64xbf16>
    %184 = vector.extract_strided_slice %179 {offsets = [0, 128], sizes = [32, 64], strides = [1, 1]} : vector<32x384xbf16> to vector<32x64xbf16>
    %185 = vector.extract_strided_slice %179 {offsets = [0, 256], sizes = [32, 64], strides = [1, 1]} : vector<32x384xbf16> to vector<32x64xbf16>
    %cst_87 = arith.constant dense<0.000000e+00> : vector<32x32xf32>
    %186 = tpu.matmul %183, %184, %cst_87 {dimension_numbers = #tpu.dot_dimension_numbers<[1], [1], [0], [0], [0, 0, 1, 0], [], []>} : vector<32x64xbf16>, vector<32x64xbf16>, vector<32x32xf32> -> vector<32x32xf32>
    %cst_88 = arith.constant 1.250000e-01 : f32
    %187 = vector.broadcast %cst_88 : f32 to vector<32x32xf32>
    %188 = arith.mulf %186, %187 : vector<32x32xf32>
    %189 = arith.addf %188, %25 : vector<32x32xf32>
    %cst_89 = arith.constant dense<0xFF800000> : vector<32xf32>
    %190 = vector.multi_reduction <maximumf>, %189, %cst_89 [1] : vector<32x32xf32> to vector<32xf32>
    %191 = vector.shape_cast %190 : vector<32xf32> to vector<32x1xf32>
    %192 = vector.broadcast %191 : vector<32x1xf32> to vector<32x32xf32>
    %193 = arith.subf %189, %192 : vector<32x32xf32>
    %194 = math.exp %193 : vector<32x32xf32>
    %cst_90 = arith.constant dense<0.000000e+00> : vector<32xf32>
    %195 = vector.multi_reduction <add>, %194, %cst_90 [1] : vector<32x32xf32> to vector<32xf32>
    %196 = vector.shape_cast %195 : vector<32xf32> to vector<32x1xf32>
    %197 = tpu.reciprocal %196 : vector<32x1xf32> -> vector<32x1xf32>
    %198 = vector.broadcast %197 : vector<32x1xf32> to vector<32x32xf32>
    %199 = arith.mulf %194, %198 : vector<32x32xf32>
    %200 = arith.truncf %199 : vector<32x32xf32> to vector<32x32xbf16>
    %cst_91 = arith.constant dense<0.000000e+00> : vector<32x64xf32>
    %201 = tpu.matmul %200, %185, %cst_91 {dimension_numbers = #tpu.dot_dimension_numbers<[1], [0], [0], [1], [0, 0, 1, 1], [], []>} : vector<32x32xbf16>, vector<32x64xbf16>, vector<32x64xf32> -> vector<32x64xf32>
    %202 = arith.truncf %201 : vector<32x64xf32> to vector<32x64xbf16>
    %203 = vector.extract_strided_slice %181 {offsets = [0, 0], sizes = [64, 128], strides = [1, 1]} : vector<128x128xbf16> to vector<64x128xbf16>
    %cst_92 = arith.constant dense<0.000000e+00> : vector<32x128xf32>
    %204 = tpu.matmul %202, %203, %cst_92 {dimension_numbers = #tpu.dot_dimension_numbers<[1], [0], [0], [1], [0, 0, 1, 1], [], []>} : vector<32x64xbf16>, vector<64x128xbf16>, vector<32x128xf32> -> vector<32x128xf32>
    %205 = arith.addf %182, %204 : vector<32x128xf32>
    %206 = vector.extract_strided_slice %179 {offsets = [0, 64], sizes = [32, 64], strides = [1, 1]} : vector<32x384xbf16> to vector<32x64xbf16>
    %207 = vector.extract_strided_slice %179 {offsets = [0, 192], sizes = [32, 64], strides = [1, 1]} : vector<32x384xbf16> to vector<32x64xbf16>
    %208 = vector.extract_strided_slice %179 {offsets = [0, 320], sizes = [32, 64], strides = [1, 1]} : vector<32x384xbf16> to vector<32x64xbf16>
    %cst_93 = arith.constant dense<0.000000e+00> : vector<32x32xf32>
    %209 = tpu.matmul %206, %207, %cst_93 {dimension_numbers = #tpu.dot_dimension_numbers<[1], [1], [0], [0], [0, 0, 1, 0], [], []>} : vector<32x64xbf16>, vector<32x64xbf16>, vector<32x32xf32> -> vector<32x32xf32>
    %cst_94 = arith.constant 1.250000e-01 : f32
    %210 = vector.broadcast %cst_94 : f32 to vector<32x32xf32>
    %211 = arith.mulf %209, %210 : vector<32x32xf32>
    %212 = arith.addf %211, %25 : vector<32x32xf32>
    %cst_95 = arith.constant dense<0xFF800000> : vector<32xf32>
    %213 = vector.multi_reduction <maximumf>, %212, %cst_95 [1] : vector<32x32xf32> to vector<32xf32>
    %214 = vector.shape_cast %213 : vector<32xf32> to vector<32x1xf32>
    %215 = vector.broadcast %214 : vector<32x1xf32> to vector<32x32xf32>
    %216 = arith.subf %212, %215 : vector<32x32xf32>
    %217 = math.exp %216 : vector<32x32xf32>
    %cst_96 = arith.constant dense<0.000000e+00> : vector<32xf32>
    %218 = vector.multi_reduction <add>, %217, %cst_96 [1] : vector<32x32xf32> to vector<32xf32>
    %219 = vector.shape_cast %218 : vector<32xf32> to vector<32x1xf32>
    %220 = tpu.reciprocal %219 : vector<32x1xf32> -> vector<32x1xf32>
    %221 = vector.broadcast %220 : vector<32x1xf32> to vector<32x32xf32>
    %222 = arith.mulf %217, %221 : vector<32x32xf32>
    %223 = arith.truncf %222 : vector<32x32xf32> to vector<32x32xbf16>
    %cst_97 = arith.constant dense<0.000000e+00> : vector<32x64xf32>
    %224 = tpu.matmul %223, %208, %cst_97 {dimension_numbers = #tpu.dot_dimension_numbers<[1], [0], [0], [1], [0, 0, 1, 1], [], []>} : vector<32x32xbf16>, vector<32x64xbf16>, vector<32x64xf32> -> vector<32x64xf32>
    %225 = arith.truncf %224 : vector<32x64xf32> to vector<32x64xbf16>
    %226 = vector.extract_strided_slice %181 {offsets = [64, 0], sizes = [64, 128], strides = [1, 1]} : vector<128x128xbf16> to vector<64x128xbf16>
    %cst_98 = arith.constant dense<0.000000e+00> : vector<32x128xf32>
    %227 = tpu.matmul %225, %226, %cst_98 {dimension_numbers = #tpu.dot_dimension_numbers<[1], [0], [0], [1], [0, 0, 1, 1], [], []>} : vector<32x64xbf16>, vector<64x128xbf16>, vector<32x128xf32> -> vector<32x128xf32>
    %228 = arith.addf %205, %227 : vector<32x128xf32>
    %c1_99 = arith.constant 1 : index
    %c0_100 = arith.constant 0 : index
    %c0_101 = arith.constant 0 : index
    %229 = vector.load %arg7[%c1_99, %c0_100, %c0_101] : memref<2x1x128xf32, #tpu.memory_space<vmem>>, vector<1x1x128xf32>
    %230 = vector.shape_cast %229 : vector<1x1x128xf32> to vector<1x128xf32>
    %231 = vector.broadcast %230 : vector<1x128xf32> to vector<32x128xf32>
    %232 = arith.addf %228, %231 : vector<32x128xf32>
    %233 = arith.addf %232, %170 : vector<32x128xf32>
    %c1_102 = arith.constant 1 : index
    %c0_103 = arith.constant 0 : index
    %c0_104 = arith.constant 0 : index
    %234 = vector.load %arg8[%c1_102, %c0_103, %c0_104] : memref<2x1x128xf32, #tpu.memory_space<vmem>>, vector<1x1x128xf32>
    %235 = vector.shape_cast %234 : vector<1x1x128xf32> to vector<1x128xf32>
    %c1_105 = arith.constant 1 : index
    %c0_106 = arith.constant 0 : index
    %c0_107 = arith.constant 0 : index
    %236 = vector.load %arg9[%c1_105, %c0_106, %c0_107] : memref<2x1x128xf32, #tpu.memory_space<vmem>>, vector<1x1x128xf32>
    %237 = vector.shape_cast %236 : vector<1x1x128xf32> to vector<1x128xf32>
    %cst_108 = arith.constant dense<0.000000e+00> : vector<32xf32>
    %238 = vector.multi_reduction <add>, %233, %cst_108 [1] : vector<32x128xf32> to vector<32xf32>
    %239 = vector.shape_cast %238 : vector<32xf32> to vector<32x1xf32>
    %cst_109 = arith.constant 1.280000e+02 : f32
    %240 = vector.broadcast %cst_109 : f32 to vector<32x1xf32>
    %241 = arith.divf %239, %240 : vector<32x1xf32>
    %242 = vector.broadcast %241 : vector<32x1xf32> to vector<32x128xf32>
    %243 = arith.subf %233, %242 : vector<32x128xf32>
    %244 = arith.mulf %243, %243 : vector<32x128xf32>
    %cst_110 = arith.constant dense<0.000000e+00> : vector<32xf32>
    %245 = vector.multi_reduction <add>, %244, %cst_110 [1] : vector<32x128xf32> to vector<32xf32>
    %246 = vector.shape_cast %245 : vector<32xf32> to vector<32x1xf32>
    %cst_111 = arith.constant 1.280000e+02 : f32
    %247 = vector.broadcast %cst_111 : f32 to vector<32x1xf32>
    %248 = arith.divf %246, %247 : vector<32x1xf32>
    %249 = vector.broadcast %241 : vector<32x1xf32> to vector<32x128xf32>
    %250 = arith.subf %233, %249 : vector<32x128xf32>
    %cst_112 = arith.constant 9.99999996E-13 : f32
    %251 = vector.broadcast %cst_112 : f32 to vector<32x1xf32>
    %252 = arith.addf %248, %251 : vector<32x1xf32>
    %253 = math.rsqrt %252 : vector<32x1xf32>
    %254 = vector.broadcast %253 : vector<32x1xf32> to vector<32x128xf32>
    %255 = arith.mulf %250, %254 : vector<32x128xf32>
    %256 = vector.broadcast %235 : vector<1x128xf32> to vector<32x128xf32>
    %257 = arith.mulf %255, %256 : vector<32x128xf32>
    %258 = vector.broadcast %237 : vector<1x128xf32> to vector<32x128xf32>
    %259 = arith.addf %257, %258 : vector<32x128xf32>
    %c1_113 = arith.constant 1 : index
    %c0_114 = arith.constant 0 : index
    %c0_115 = arith.constant 0 : index
    %260 = vector.load %arg10[%c1_113, %c0_114, %c0_115] : memref<2x128x256xbf16, #tpu.memory_space<vmem>>, vector<1x128x256xbf16>
    %261 = vector.shape_cast %260 : vector<1x128x256xbf16> to vector<128x256xbf16>
    %262 = arith.truncf %259 : vector<32x128xf32> to vector<32x128xbf16>
    %cst_116 = arith.constant dense<0.000000e+00> : vector<32x256xf32>
    %263 = tpu.matmul %262, %261, %cst_116 {dimension_numbers = #tpu.dot_dimension_numbers<[1], [0], [0], [1], [0, 0, 1, 1], [], []>} : vector<32x128xbf16>, vector<128x256xbf16>, vector<32x256xf32> -> vector<32x256xf32>
    %c1_117 = arith.constant 1 : index
    %c0_118 = arith.constant 0 : index
    %c0_119 = arith.constant 0 : index
    %264 = vector.load %arg11[%c1_117, %c0_118, %c0_119] : memref<2x1x256xf32, #tpu.memory_space<vmem>>, vector<1x1x256xf32>
    %265 = vector.shape_cast %264 : vector<1x1x256xf32> to vector<1x256xf32>
    %266 = vector.broadcast %265 : vector<1x256xf32> to vector<32x256xf32>
    %267 = arith.addf %263, %266 : vector<32x256xf32>
    %cst_120 = arith.constant 5.000000e-01 : f32
    %268 = vector.broadcast %cst_120 : f32 to vector<32x256xf32>
    %269 = arith.mulf %268, %267 : vector<32x256xf32>
    %cst_121 = arith.constant 4.471500e-02 : f32
    %270 = vector.broadcast %cst_121 : f32 to vector<32x256xf32>
    %271 = arith.mulf %270, %267 : vector<32x256xf32>
    %272 = arith.mulf %271, %267 : vector<32x256xf32>
    %273 = arith.mulf %272, %267 : vector<32x256xf32>
    %274 = arith.addf %267, %273 : vector<32x256xf32>
    %cst_122 = arith.constant 0.797884583 : f32
    %275 = vector.broadcast %cst_122 : f32 to vector<32x256xf32>
    %276 = arith.mulf %275, %274 : vector<32x256xf32>
    %277 = math.tanh %276 : vector<32x256xf32>
    %cst_123 = arith.constant 1.000000e+00 : f32
    %278 = vector.broadcast %cst_123 : f32 to vector<32x256xf32>
    %279 = arith.addf %278, %277 : vector<32x256xf32>
    %280 = arith.mulf %269, %279 : vector<32x256xf32>
    %c1_124 = arith.constant 1 : index
    %c0_125 = arith.constant 0 : index
    %c0_126 = arith.constant 0 : index
    %281 = vector.load %arg12[%c1_124, %c0_125, %c0_126] : memref<2x256x128xbf16, #tpu.memory_space<vmem>>, vector<1x256x128xbf16>
    %282 = vector.shape_cast %281 : vector<1x256x128xbf16> to vector<256x128xbf16>
    %283 = arith.truncf %280 : vector<32x256xf32> to vector<32x256xbf16>
    %cst_127 = arith.constant dense<0.000000e+00> : vector<32x128xf32>
    %284 = tpu.matmul %283, %282, %cst_127 {dimension_numbers = #tpu.dot_dimension_numbers<[1], [0], [0], [1], [0, 0, 1, 1], [], []>} : vector<32x256xbf16>, vector<256x128xbf16>, vector<32x128xf32> -> vector<32x128xf32>
    %c1_128 = arith.constant 1 : index
    %c0_129 = arith.constant 0 : index
    %c0_130 = arith.constant 0 : index
    %285 = vector.load %arg13[%c1_128, %c0_129, %c0_130] : memref<2x1x128xf32, #tpu.memory_space<vmem>>, vector<1x1x128xf32>
    %286 = vector.shape_cast %285 : vector<1x1x128xf32> to vector<1x128xf32>
    %287 = vector.broadcast %286 : vector<1x128xf32> to vector<32x128xf32>
    %288 = arith.addf %284, %287 : vector<32x128xf32>
    %289 = arith.addf %288, %259 : vector<32x128xf32>
    %c1_131 = arith.constant 1 : index
    %c0_132 = arith.constant 0 : index
    %c0_133 = arith.constant 0 : index
    %290 = vector.load %arg14[%c1_131, %c0_132, %c0_133] : memref<2x1x128xf32, #tpu.memory_space<vmem>>, vector<1x1x128xf32>
    %291 = vector.shape_cast %290 : vector<1x1x128xf32> to vector<1x128xf32>
    %c1_134 = arith.constant 1 : index
    %c0_135 = arith.constant 0 : index
    %c0_136 = arith.constant 0 : index
    %292 = vector.load %arg15[%c1_134, %c0_135, %c0_136] : memref<2x1x128xf32, #tpu.memory_space<vmem>>, vector<1x1x128xf32>
    %293 = vector.shape_cast %292 : vector<1x1x128xf32> to vector<1x128xf32>
    %cst_137 = arith.constant dense<0.000000e+00> : vector<32xf32>
    %294 = vector.multi_reduction <add>, %289, %cst_137 [1] : vector<32x128xf32> to vector<32xf32>
    %295 = vector.shape_cast %294 : vector<32xf32> to vector<32x1xf32>
    %cst_138 = arith.constant 1.280000e+02 : f32
    %296 = vector.broadcast %cst_138 : f32 to vector<32x1xf32>
    %297 = arith.divf %295, %296 : vector<32x1xf32>
    %298 = vector.broadcast %297 : vector<32x1xf32> to vector<32x128xf32>
    %299 = arith.subf %289, %298 : vector<32x128xf32>
    %300 = arith.mulf %299, %299 : vector<32x128xf32>
    %cst_139 = arith.constant dense<0.000000e+00> : vector<32xf32>
    %301 = vector.multi_reduction <add>, %300, %cst_139 [1] : vector<32x128xf32> to vector<32xf32>
    %302 = vector.shape_cast %301 : vector<32xf32> to vector<32x1xf32>
    %cst_140 = arith.constant 1.280000e+02 : f32
    %303 = vector.broadcast %cst_140 : f32 to vector<32x1xf32>
    %304 = arith.divf %302, %303 : vector<32x1xf32>
    %305 = vector.broadcast %297 : vector<32x1xf32> to vector<32x128xf32>
    %306 = arith.subf %289, %305 : vector<32x128xf32>
    %cst_141 = arith.constant 9.99999996E-13 : f32
    %307 = vector.broadcast %cst_141 : f32 to vector<32x1xf32>
    %308 = arith.addf %304, %307 : vector<32x1xf32>
    %309 = math.rsqrt %308 : vector<32x1xf32>
    %310 = vector.broadcast %309 : vector<32x1xf32> to vector<32x128xf32>
    %311 = arith.mulf %306, %310 : vector<32x128xf32>
    %312 = vector.broadcast %291 : vector<1x128xf32> to vector<32x128xf32>
    %313 = arith.mulf %311, %312 : vector<32x128xf32>
    %314 = vector.broadcast %293 : vector<1x128xf32> to vector<32x128xf32>
    %315 = arith.addf %313, %314 : vector<32x128xf32>
    %c0_142 = arith.constant 0 : index
    %c0_143 = arith.constant 0 : index
    %316 = vector.load %arg16[%c0_142, %c0_143] : memref<128x128xbf16, #tpu.memory_space<vmem>>, vector<128x128xbf16>
    %317 = arith.truncf %315 : vector<32x128xf32> to vector<32x128xbf16>
    %cst_144 = arith.constant dense<0.000000e+00> : vector<32x128xf32>
    %318 = tpu.matmul %317, %316, %cst_144 {dimension_numbers = #tpu.dot_dimension_numbers<[1], [0], [0], [1], [0, 0, 1, 1], [], []>} : vector<32x128xbf16>, vector<128x128xbf16>, vector<32x128xf32> -> vector<32x128xf32>
    %c0_145 = arith.constant 0 : index
    %c0_146 = arith.constant 0 : index
    %319 = vector.load %arg17[%c0_145, %c0_146] : memref<1x128xf32, #tpu.memory_space<vmem>>, vector<1x128xf32>
    %320 = vector.broadcast %319 : vector<1x128xf32> to vector<32x128xf32>
    %321 = arith.addf %318, %320 : vector<32x128xf32>
    %c0_147 = arith.constant 0 : index
    %c0_148 = arith.constant 0 : index
    %322 = vector.load %arg18[%c0_147, %c0_148] : memref<32x128xf32, #tpu.memory_space<vmem>>, vector<32x128xf32>
    tpu.vector_store %arg18[%c0_147, %c0_148], %321 {strides = array<i32>} : memref<32x128xf32, #tpu.memory_space<vmem>>, vector<32x128xf32>,
    return
  }
}

</mosaic_0001>

<bundles_post_ra>
// kernel: train_model_forward.1
= control target key start
LH: loop header
LB: loop body
LE: loop exit
PB: predicated region body
PF: predicated region fallthrough
CT: control target
= control target key end

     0   :  { %v3996_v39 = vmov 0   ;;  %vm438_vm0 = vcmask 523264   ;;  %vm508_vm1 = vcmask 261120   ;;  %s3997_s28 = smov 64   ;;  %s5026_s0 = inlined_call_operand.vmem [shape: f32[32,128], index: 0, kind: input, shape index: {}]   ;;  %s5027_s4 = inlined_call_operand.vmem [shape: bf16[2,128,384], index: 4, kind: input, shape index: {}]   ;;  %s5028_s2 = inlined_call_operand.vmem [shape: f32[1,128], index: 2, kind: input, shape index: {}]   ;;  %s5029_s3 = inlined_call_operand.vmem [shape: f32[1,128], index: 3, kind: input, shape index: {}]   ;;  %s5030_s5 = inlined_call_operand.vmem [shape: f32[2,1,384], index: 5, kind: input, shape index: {}]   ;;  %s5031_s1 = inlined_call_operand.vmem [shape: f32[32,32], index: 1, kind: input, shape index: {}]   ;;  %s5032_s6 = inlined_call_operand.vmem [shape: bf16[2,128,128], index: 6, kind: input, shape index: {}]   ;;  %s5033_s7 = inlined_call_operand.vmem [shape: f32[2,1,128], index: 7, kind: input, shape index: {}]   ;;  %s5034_s10 = inlined_call_operand.vmem [shape: bf16[2,128,256], index: 10, kind: input, shape index: {}]   ;;  %s5035_s8 = inlined_call_operand.vmem [shape: f32[2,1,128], index: 8, kind: input, shape index: {}]   ;;  %s5036_s9 = inlined_call_operand.vmem [shape: f32[2,1,128], index: 9, kind: input, shape index: {}]   ;;  %s5037_s12 = inlined_call_operand.vmem [shape: bf16[2,256,128], index: 12, kind: input, shape index: {}]   ;;  %s5038_s11 = inlined_call_operand.vmem [shape: f32[2,1,256], index: 11, kind: input, shape index: {}]   ;;  %s5039_s13 = inlined_call_operand.vmem [shape: f32[2,1,128], index: 13, kind: input, shape index: {}]   ;;  %s5040_s14 = inlined_call_operand.vmem [shape: f32[2,1,128], index: 14, kind: input, shape index: {}]   ;;  %s5041_s15 = inlined_call_operand.vmem [shape: f32[2,1,128], index: 15, kind: input, shape index: {}]   ;;  %s5042_s16 = inlined_call_operand.vmem [shape: bf16[128,128], index: 16, kind: input, shape index: {}]   ;;  %s5043_s17 = inlined_call_operand.vmem [shape: f32[1,128], index: 17, kind: input, shape index: {}]   ;;  %s5044_s18 = inlined_call_operand.vmem [shape: f32[32,128], index: 18, kind: output, shape index: {}]  }
   0x1   :  { %5047 = sst [smem:[#allocation2_spill]] %s5026_s0  ;;  %346 = vmatprep.mubr.bf16.mxu0 %v3996_v39 }
   0x2   :  { %5048 = sst [smem:[#allocation3_spill]] %s5027_s4  ;;  %s5050_s29 = sld [smem:[#allocation2_spill]] }
   0x3   :  { %5049 = sst [smem:[#allocation4_spill]] %s5028_s2  ;;  %s5051_s23 = sld [smem:[#allocation3_spill]] }
   0x8   :  { %v60_v0 = vld [vmem:[%s5050_s29] sm:$0xff]  ;;  %v62_v1 = vld [vmem:[%s5050_s29 + $0x10] sm:$0xff]  ;;  %v61_v2 = vld [vmem:[%s5050_s29 + $0x8] sm:$0xff] }
   0x9   :  { %66 = vadd.xlane.f32.xlu0 %v60_v0  ;;  %70 = vadd.xlane.f32.xlu1 %v62_v1  ;;  %v63_v3 = vld [vmem:[%s5050_s29 + $0x18] sm:$0xff]  ;;  %v3688_v4 = vld [vmem:[%s5051_s23 + $0x4] ss:$12 sps:$4 sm:$0xff]   ;;  %v3690_v5 = vld [vmem:[%s5051_s23] ss:$12 sps:$4 sm:$0xff]   ;;  %s5052_s29 = sld [smem:[#allocation4_spill]] }
   0xa   :  { %314 = vmatprep.subr.bf16.mxu0 %v3688_v4  ;;  %v3691_v6 = vld [vmem:[%s5051_s23 + $0x1c] ss:$12 sps:$4 sm:$0xff]   ;;  %v3694_v24 = vld [vmem:[%s5051_s23 + $0x18] ss:$12 sps:$4 sm:$0xff]   ;;  %v3695_v25 = vld [vmem:[%s5051_s23 + $0x34] ss:$12 sps:$4 sm:$0xff]  }
   0xb   :  { %315 = vmatpush1.bf16.msra.mxu0 %v3690_v5  ;;  %v3693_v7 = vld [vmem:[%s5051_s23 + $0x8] ss:$12 sps:$4 sm:$0xff]   ;;  %v3697_v26 = vld [vmem:[%s5051_s23 + $0x20] ss:$12 sps:$4 sm:$0xff]   ;;  %v3698_v27 = vld [vmem:[%s5051_s23 + $0x30] ss:$12 sps:$4 sm:$0xff]  }
   0xc   :  { %316 = vmatprep.subr.bf16.mxu0 %v3691_v6  ;;  %3498 = vmatprep.subr.bf16.mxu1 %v3693_v7  ;;  %v3699_v28 = vld [vmem:[%s5051_s23 + $0x4c] ss:$12 sps:$4 sm:$0xff]   ;;  %v3702_v30 = vld [vmem:[%s5051_s23 + $0x48] ss:$12 sps:$4 sm:$0xff]   ;;  %v3703_v31 = vld [vmem:[%s5051_s23 + $0x64] ss:$12 sps:$4 sm:$0xff]  }
   0xd   :  { %68 = vadd.xlane.f32.xlu0 %v61_v2  ;;  %72 = vadd.xlane.f32.xlu1 %v63_v3  ;;  %v3701_v29 = vld [vmem:[%s5051_s23 + $0x38] ss:$12 sps:$4 sm:$0xff]   ;;  %v3705_v32 = vld [vmem:[%s5051_s23 + $0x50] ss:$12 sps:$4 sm:$0xff]   ;;  %v3706_v33 = vld [vmem:[%s5051_s23 + $0x60] ss:$12 sps:$4 sm:$0xff]  }
   0xe   :  { %3499 = vmatpush3.bf16.msra.mxu1 %v3693_v7  ;;  %v3707_v34 = vld [vmem:[%s5051_s23 + $0x7c] ss:$12 sps:$4 sm:$0xff]   ;;  %v3710_v36 = vld [vmem:[%s5051_s23 + $0x78] ss:$12 sps:$4 sm:$0xff]   ;;  %v3711_v37 = vld [vmem:[%s5051_s23 + $0x94] ss:$12 sps:$4 sm:$0xff]  }
   0xf   :  { %317 = vmatpush1.bf16.msra.mxu0 %v3694_v24  ;;  %3500 = vmatprep.subr.bf16.mxu1 %v3697_v26  ;;  %v3709_v35 = vld [vmem:[%s5051_s23 + $0x68] ss:$12 sps:$4 sm:$0xff]   ;;  %v3713_v38 = vld [vmem:[%s5051_s23 + $0x80] ss:$12 sps:$4 sm:$0xff]   ;;  %v3714_v40 = vld [vmem:[%s5051_s23 + $0x90] ss:$12 sps:$4 sm:$0xff]  }
  0x10   :  { %318 = vmatprep.subr.bf16.mxu0 %v3695_v25  ;;  %v3715_v41 = vld [vmem:[%s5051_s23 + $0xac] ss:$12 sps:$4 sm:$0xff]   ;;  %v3718_v43 = vld [vmem:[%s5051_s23 + $0xa8] ss:$12 sps:$4 sm:$0xff]   ;;  %v3719_v44 = vld [vmem:[%s5051_s23 + $0xb0] ss:$12 sps:$4 sm:$0xff]  }
  0x11   :  { %v3717_v42 = vld [vmem:[%s5051_s23 + $0x98] ss:$12 sps:$4 sm:$0xff]   ;;  %v3077_v59 = vld [vmem:[%s5052_s29] ss:$0 sm:$0xff] }
  0x12   :  { %3501 = vmatpush3.bf16.msra.mxu1 %v3697_v26 }
  0x13   :  { %319 = vmatpush1.bf16.msra.mxu0 %v3698_v27  ;;  %3502 = vmatprep.subr.bf16.mxu1 %v3701_v29 }
  0x14   :  { %320 = vmatprep.subr.bf16.mxu0 %v3699_v28 }
  0x16   :  { %3503 = vmatpush3.bf16.msra.mxu1 %v3701_v29 }
  0x17   :  { %321 = vmatpush1.bf16.msra.mxu0 %v3702_v30  ;;  %3504 = vmatprep.subr.bf16.mxu1 %v3705_v32 }
  0x18   :  { %322 = vmatprep.subr.bf16.mxu0 %v3703_v31 }
  0x1a   :  { %3505 = vmatpush3.bf16.msra.mxu1 %v3705_v32 }
  0x1b   :  { %323 = vmatpush1.bf16.msra.mxu0 %v3706_v33  ;;  %3506 = vmatprep.subr.bf16.mxu1 %v3709_v35 }
  0x1c   :  { %324 = vmatprep.subr.bf16.mxu0 %v3707_v34 }
  0x1e   :  { %3507 = vmatpush3.bf16.msra.mxu1 %v3709_v35 }
  0x1f   :  { %325 = vmatpush1.bf16.msra.mxu0 %v3710_v36  ;;  %3508 = vmatprep.subr.bf16.mxu1 %v3713_v38 }
  0x20   :  { %326 = vmatprep.subr.bf16.mxu0 %v3711_v37 }
  0x22   :  { %3509 = vmatpush3.bf16.msra.mxu1 %v3713_v38 }
  0x23   :  { %327 = vmatpush1.bf16.msra.mxu0 %v3714_v40  ;;  %3510 = vmatprep.subr.bf16.mxu1 %v3717_v42 }
  0x24   :  { %328 = vmatprep.subr.bf16.mxu0 %v3715_v41 }
  0x26   :  { %3511 = vmatpush3.bf16.msra.mxu1 %v3717_v42 }
  0x27   :  { %329 = vmatpush1.bf16.msra.mxu0 %v3718_v43  ;;  %3512 = vmatprep.subr.bf16.mxu1 %v3719_v44 }
  0x2a   :  { %3513 = vmatpush3.bf16.msra.mxu1 %v3719_v44 }
  0x96   :  { %v67_v8 = vpop.xlane.xlu0 %66  ;;  %v71_v9 = vpop.xlane.xlu1 %70 }
  0x97   :  { %v75_v10 = vmul.f32 0.0078125, %v67_v8  ;;  %v77_v11 = vmul.f32 0.0078125, %v71_v9 }
  0x99   :  { %v4117_v12 = vsub.f32 %v60_v0, %v75_v10  ;;  %v4119_v13 = vsub.f32 %v62_v1, %v77_v11  ;;  %v3078_v0 = vld [vmem:[%s5029_s3] ss:$0 sm:$0xff] }
  0x9a   :  { %v69_v14 = vpop.xlane.xlu0 %68  ;;  %v73_v15 = vpop.xlane.xlu1 %72 }
  0x9b   :  { %v76_v16 = vmul.f32 0.0078125, %v69_v14  ;;  %v83_v17 = vmul.f32 %v4117_v12, %v4117_v12  ;;  %v78_v18 = vmul.f32 0.0078125, %v73_v15  ;;  %v85_v21 = vmul.f32 %v4119_v13, %v4119_v13 }
  0x9d   :  { %v4123_v19 = vsub.f32 %v61_v2, %v76_v16  ;;  %87 = vadd.xlane.f32.xlu0 %v83_v17  ;;  %v4125_v20 = vsub.f32 %v63_v3, %v78_v18  ;;  %v169_v16 = vld [vmem:[%s5030_s5] sm:$0x7] }
  0x9f   :  { %v84_v22 = vmul.f32 %v4123_v19, %v4123_v19  ;;  %v86_v23 = vmul.f32 %v4125_v20, %v4125_v20 }
  0xa1   :  { %91 = vadd.xlane.f32.xlu0 %v85_v21  ;;  %89 = vadd.xlane.f32.xlu1 %v84_v22 }
  0xa5   :  { %93 = vadd.xlane.f32.xlu1 %v86_v23 }
 0x12a   :  { %v88_v45 = vpop.xlane.xlu0 %87 }
 0x12b   :  { %v95_v46 = vmul.f32 0.0078125, %v88_v45 }
 0x12d   :  { %v99_v47 = vadd.f32 1e-12, %v95_v46 }
 0x12e   :  { %v90_v48 = vpop.xlane.xlu1 %89  ;;  %v92_v49 = vpop.xlane.xlu0 %91 }
 0x12f   :  { %3856 = vrsqrt.f32 %v99_v47  ;;  %v96_v50 = vmul.f32 0.0078125, %v90_v48  ;;  %v97_v51 = vmul.f32 0.0078125, %v92_v49 }
 0x131   :  { %v100_v52 = vadd.f32 1e-12, %v96_v50  ;;  %v101_v53 = vadd.f32 1e-12, %v97_v51 }
 0x132   :  { %v94_v54 = vpop.xlane.xlu1 %93 }
 0x133   :  { %3858 = vrsqrt.f32 %v100_v52  ;;  %v98_v55 = vmul.f32 0.0078125, %v94_v54 }
 0x134   :  { %3860 = vrsqrt.f32 %v101_v53 }
 0x135   :  { %v102_v56 = vadd.f32 1e-12, %v98_v55 }
 0x137   :  { %3862 = vrsqrt.f32 %v102_v56 }
 0x139   :  { %v3857_v57 = vpop.eup %3856 }
 0x13a   :  { %v107_v58 = vmul.f32 %v3857_v57, %v4117_v12  ;;  %v4260_v57 = vld [vmem:[%s5031_s1] sm:$0xff] }
 0x13c   :  { %v117_v63 = vmul.f32 %v3077_v59, %v107_v58 }
 0x13d   :  { %v3859_v60 = vpop.eup %3858 }
 0x13e   :  { %v3861_v61 = vpop.eup %3860  ;;  %v108_v62 = vmul.f32 %v3859_v60, %v4123_v19  ;;  %v4203_v4 = vadd.f32 %v3078_v0, %v117_v63  ;;  %v4270_v63 = vld [vmem:[%s5031_s1 + $0x10] sm:$0xff] }
 0x13f   :  { %v109_v1 = vmul.f32 %v3861_v61, %v4119_v13  ;;  %v171_v13 = vlaneseq }
 0x140   :  { %v118_v2 = vmul.f32 %v3077_v59, %v108_v62  ;;  %v4265_v62 = vld [vmem:[%s5031_s1 + $0x8] sm:$0xff] }
 0x141   :  { %v3863_v3 = vpop.eup %3862  ;;  %v119_v7 = vmul.f32 %v3077_v59, %v109_v1  ;;  %v4217_v14 = vshrl.u32 %v171_v13, 7 }
 0x142   :  { %v4205_v5 = vadd.f32 %v3078_v0, %v118_v2  ;;  %v110_v6 = vmul.f32 %v3863_v3, %v4125_v20  ;;  %v4276_v3 = vld [vmem:[%s5031_s1 + $0x18] sm:$0xff] }
 0x143   :  { %v4210_v10 = vadd.f32 %v3078_v0, %v119_v7  ;;  %v4220_v15 = vsub.s32 0, %v4217_v14  ;;  %v4226_v17 = vsub.s32 1, %v4217_v14  ;;  %v181_v19 = vsub.s32 2, %v4217_v14 }
 0x144   :  { %v167_v8 = vpack.c.bf16 %v4205_v5, %v4203_v4  ;;  %v120_v9 = vmul.f32 %v3077_v59, %v110_v6 }
 0x145   :  { %v174_v18 = vrot.slane %v169_v16, %v4220_v15  ;;  %v178_v21 = vrot.slane %v169_v16, %v4226_v17  ;;  %v182_v27 = vrot.slane %v169_v16, %v181_v19 }
 0x146   :  { %347 = vmatmul.mubr.bf16.vlgmr.msra.gmra.mrb[0].mxu0 %v167_v8  ;;  %3514 = vmatprep.mubr.bf16.mxu1 %v167_v8  ;;  %v4212_v11 = vadd.f32 %v3078_v0, %v120_v9 }
 0x147   :  { %356 = vmatprep.mubr.bf16.mxu0 %v3996_v39 }
 0x148   :  { %v168_v12 = vpack.c.bf16 %v4212_v11, %v4210_v10 }
 0x14a   :  { %3515 = vmatmul.mubr.bf16.vlgmr.msra.gmra.mrb[0].mxu1 %v168_v12 }
 0x14e   :  { %357 = vmatmul.mubr.bf16.gmra.mrb[4].mxu0 %v168_v12 }
 0x219   :  { %v348_v20 = vpop.f32.mrb[0].mxu0 }
 0x21a   :  { %v350_v22 = vpop.f32.mrb[1].mxu0  ;;  %v349_v24 = vadd.f32 %v348_v20, %v174_v18 }
 0x21b   :  { %v352_v23 = vpop.f32.mrb[2].mxu0  ;;  %v351_v28 = vadd.f32 %v350_v22, %v178_v21 }
 0x21c   :  { %v353_v25 = vadd.f32 %v352_v23, %v174_v18  ;;  %v354_v26 = vpop.f32.mrb[3].mxu0 }
 0x21d   :  { %v355_v29 = vadd.f32 %v354_v26, %v178_v21  ;;  %v3516_v30 = vpop.f32.mrb[0].mxu1 }
 0x21e   :  { %v4233_v31 = vpack.c.bf16 %v353_v25, %v349_v24  ;;  %v401_v32 = vpop.f32.mrb[1].mxu1  ;;  %v410_v35 = vadd.f32 %v3516_v30, %v182_v27 }
 0x21f   :  { %v4235_v33 = vpack.c.bf16 %v355_v29, %v351_v28  ;;  %v3517_v34 = vpop.f32.mrb[2].mxu1  ;;  %v402_v38 = vadd.f32 %v401_v32, %v182_v27 }
 0x220   :  { %v413_v36 = vadd.f32 %v3517_v34, %v182_v27  ;;  %v404_v37 = vpop.f32.mrb[3].mxu1  ;;  %3522 = vmatprep.mubr.msk.bf16.mxu0 %vm438_vm0, %v4233_v31 }
 0x221   :  { %v405_v40 = vadd.f32 %v404_v37, %v182_v27  ;;  %v358_v41 = vpop.f32.mrb[4].mxu0  ;;  %3678 = vmatprep.subr.msk.bf16.mxu0 %vm438_vm0, %v4235_v33  ;;  %v446_v42 = vsel %vm438_vm0, %v4235_v33, 0 }
 0x222   :  { %v4243_v43 = vpack.c.bf16 %v413_v36, %v410_v35  ;;  %v360_v44 = vpop.f32.mrb[5].mxu0  ;;  %3519 = vmatpush3.bf16.xpose.msra.mxu0 %v446_v42  ;;  %v359_v47 = vadd.f32 %v358_v41, %v174_v18 }
 0x223   :  { %v4245_v45 = vpack.c.bf16 %v405_v40, %v402_v38  ;;  %v362_v46 = vpop.f32.mrb[6].mxu0  ;;  %v361_v50 = vadd.f32 %v360_v44, %v178_v21 }
 0x224   :  { %v363_v48 = vadd.f32 %v362_v46, %v174_v18  ;;  %v364_v49 = vpop.f32.mrb[7].mxu0 }
 0x225   :  { %v365_v51 = vadd.f32 %v364_v49, %v178_v21  ;;  %3526 = vmatprep.subr.bf16.mxu1 %v4245_v45 }
 0x226   :  { %v4248_v52 = vpack.c.bf16 %v363_v48, %v359_v47  ;;  %3527 = vmatpush3.bf16.msra.mxu1 %v4245_v45 }
 0x227   :  { %v420_v53 = vpack.c.bf16 %v365_v51, %v361_v50  ;;  %3528 = vmatprep.subr.bf16.mxu1 %v4243_v43 }
 0x229   :  { %3679 = vmatprep.subr.msk.bf16.mxu0 %vm438_vm0, %v420_v53  ;;  %v449_v54 = vsel %vm438_vm0, %v420_v53, 0 }
 0x22a   :  { %3521 = vmatpush3.bf16.xpose.msra.mxu0 %v449_v54  ;;  %3529 = vmatpush3.bf16.msra.mxu1 %v4243_v43 }
 0x231   :  { %3523 = vmatmul.mubr.msk.bf16.vlgmr.msra.gmra.mrb[8].mxu0 %vm438_vm0, %v4248_v52 }
 0x304   :  { %v3524_v55 = vpop.f32.mrb[8].mxu0 }
 0x305   :  { %v485_v56 = vpop.f32.mrb[9].mxu0  ;;  %v502_v58 = vmul.f32 0.125, %v3524_v55 }
 0x306   :  { %v500_v59 = vmul.f32 0.125, %v485_v56  ;;  %v3525_v60 = vpop.f32.mrb[10].mxu0 }
 0x307   :  { %v488_v61 = vpop.f32.mrb[11].mxu0  ;;  %v503_v0 = vmul.f32 0.125, %v3525_v60  ;;  %v506_v8 = vadd.f32 %v502_v58, %v4270_v63 }
 0x308   :  { %v501_v1 = vmul.f32 0.125, %v488_v61  ;;  %v504_v2 = vadd.f32 %v500_v59, %v4260_v57 }
 0x309   :  { %v507_v12 = vadd.f32 %v503_v0, %v4276_v3  ;;  %v515_v13 = vsel %vm508_vm1, %v506_v8, -inf }
 0x30a   :  { %v509_v6 = vsel %vm508_vm1, %v504_v2, -inf  ;;  %v505_v7 = vadd.f32 %v501_v1, %v4265_v62 }
 0x30b   :  { %510 = vmax.xlane.f32.xlu0 %v509_v6  ;;  %v518_v16 = vsel %vm508_vm1, %v507_v12, -inf }
 0x30c   :  { %v512_v9 = vsel %vm508_vm1, %v505_v7, -inf }
 0x30d   :  { %513 = vmax.xlane.f32.xlu1 %v512_v9 }
 0x30f   :  { %516 = vmax.xlane.f32.xlu0 %v515_v13 }
 0x311   :  { %519 = vmax.xlane.f32.xlu1 %v518_v16 }
 0x398   :  { %v511_v18 = vpop.xlane.xlu0 %510 }
 0x399   :  { %v521_v20 = vsub.f32 %v504_v2, %v511_v18 }
 0x39a   :  { %v514_v21 = vpop.xlane.xlu1 %513 }
 0x39b   :  { %v522_v22 = vsub.f32 %v505_v7, %v514_v21  ;;  %v525_v26 = vmul.f32 1.442695, %v521_v20 }
 0x39c   :  { %v517_v23 = vpop.xlane.xlu0 %516 }
 0x39d   :  { %v527_v24 = vmul.f32 1.442695, %v522_v22  ;;  %v523_v25 = vsub.f32 %v506_v8, %v517_v23 }
 0x39e   :  { %v520_v27 = vpop.xlane.xlu1 %519 }
 0x39f   :  { %3864 = vpow2.f32 %v527_v24  ;;  %v529_v28 = vmul.f32 1.442695, %v523_v25  ;;  %v524_v29 = vsub.f32 %v507_v12, %v520_v27 }
 0x3a1   :  { %3866 = vpow2.f32 %v529_v28  ;;  %v531_v30 = vmul.f32 1.442695, %v524_v29 }
 0x3a2   :  { %3868 = vpow2.f32 %v525_v26 }
 0x3a3   :  { %3870 = vpow2.f32 %v531_v30 }
 0x3a9   :  { %v3865_v32 = vpop.eup %3864 }
 0x3aa   :  { %v536_v34 = vsel %vm508_vm1, %v3865_v32, 0.0 }
 0x3ab   :  { %v3867_v35 = vpop.eup %3866  ;;  %537 = vadd.xlane.f32.xlu1 %v536_v34 }
 0x3ac   :  { %v3869_v36 = vpop.eup %3868  ;;  %v539_v37 = vsel %vm508_vm1, %v3867_v35, 0.0 }
 0x3ad   :  { %v3871_v38 = vpop.eup %3870  ;;  %540 = vadd.xlane.f32.xlu0 %v539_v37  ;;  %v533_v41 = vsel %vm508_vm1, %v3869_v36, 0.0 }
 0x3ae   :  { %v542_v40 = vsel %vm508_vm1, %v3871_v38, 0.0 }
 0x3af   :  { %543 = vadd.xlane.f32.xlu1 %v542_v40 }
 0x3b1   :  { %534 = vadd.xlane.f32.xlu0 %v533_v41 }
 0x3c0   :  { %622 = vrot.lane.b32.xlu1 %v420_v53, %s3997_s28 }
 0x3c4   :  { %614 = vrot.lane.b32.xlu1 %v4233_v31, %s3997_s28 }
 0x3c7   :  { %620 = vrot.lane.b32.xlu0 %v4235_v33, %s3997_s28 }
 0x3c8   :  { %616 = vrot.lane.b32.xlu1 %v4248_v52, %s3997_s28 }
 0x438   :  { %v538_v42 = vpop.xlane.xlu1 %537 }
 0x439   :  { %3872 = vrcp.f32 %v538_v42 }
 0x43a   :  { %v541_v44 = vpop.xlane.xlu0 %540 }
 0x43c   :  { %v544_v46 = vpop.xlane.xlu1 %543 }
 0x43d   :  { %3874 = vrcp.f32 %v544_v46 }
 0x43e   :  { %3876 = vrcp.f32 %v541_v44  ;;  %v535_v47 = vpop.xlane.xlu0 %534 }
 0x43f   :  { %3878 = vrcp.f32 %v535_v47 }
 0x440   :  { %v623_v33 = vpop.permute.xlu1 %622 }
 0x441   :  { %v634_v61 = vsel %vm438_vm0, %v623_v33, 0 }
 0x442   :  { %v621_v48 = vpop.permute.xlu0 %620 }
 0x443   :  { %3680 = vmatprep.subr.msk.bf16.mxu1 %vm438_vm0, %v621_v48  ;;  %v3873_v49 = vpop.eup %3872  ;;  %v631_v59 = vsel %vm438_vm0, %v621_v48, 0 }
 0x444   :  { %v550_v55 = vmul.f32 %v3873_v49, %v3865_v32  ;;  %v615_v60 = vpop.permute.xlu1 %614 }
 0x447   :  { %v3875_v50 = vpop.eup %3874 }
 0x448   :  { %v3877_v31 = vpop.eup %3876  ;;  %v552_v53 = vmul.f32 %v3875_v50, %v3871_v38  ;;  %v617_v0 = vpop.permute.xlu1 %616 }
 0x449   :  { %v3879_v51 = vpop.eup %3878  ;;  %v551_v52 = vmul.f32 %v3877_v31, %v3867_v35 }
 0x44a   :  { %v549_v54 = vmul.f32 %v3879_v51, %v3869_v36 }
 0x44b   :  { %v554_v58 = vpack.c.bf16 %v552_v53, %v551_v52 }
 0x44c   :  { %v553_v56 = vpack.c.bf16 %v550_v55, %v549_v54 }
 0x44e   :  { %3530 = vmatprep.mubr.msk.bf16.mxu1 %vm508_vm1, %v553_v56  ;;  %v3720_v56 = vld [vmem:[%s5032_s6 + $0x20] sm:$0xff]  }
 0x44f   :  { %3531 = vmatmul.mubr.msk.bf16.vlgmr.msra.gmra.mrb[4].mxu1 %vm508_vm1, %v554_v58 }
 0x450   :  { %3535 = vmatpush3.bf16.xpose.msra.mxu1 %v631_v59  ;;  %3538 = vmatprep.mubr.msk.bf16.mxu1 %vm438_vm0, %v615_v60 }
 0x451   :  { %3681 = vmatprep.subr.msk.bf16.mxu1 %vm438_vm0, %v623_v33 }
 0x458   :  { %3537 = vmatpush3.bf16.xpose.msra.mxu1 %v634_v61 }
 0x45f   :  { %3539 = vmatmul.mubr.msk.bf16.vlgmr.msra.gmra.mrb[8].mxu1 %vm438_vm0, %v617_v0 }
 0x460   :  { %1185 = vmatprep.mubr.bf16.mxu1 %v3996_v39 }
 0x522   :  { %v4305_v1 = vpop.f32.mrb[4].mxu1 }
 0x523   :  { %v4307_v2 = vpop.f32.mrb[5].mxu1 }
 0x524   :  { %v4309_v6 = vpop.f32.mrb[6].mxu1 }
 0x525   :  { %v611_v7 = vpack.c.bf16 %v4309_v6, %v4305_v1  ;;  %v4313_v8 = vpop.f32.mrb[7].mxu1 }
 0x526   :  { %v610_v9 = vpack.c.bf16 %v4313_v8, %v4307_v2  ;;  %v3123_v2 = vld [vmem:[%s5033_s7] ss:$0 sm:$0xff] }
 0x532   :  { %v3540_v12 = vpop.f32.mrb[8].mxu1 }
 0x533   :  { %v670_v13 = vpop.f32.mrb[9].mxu1  ;;  %v687_v16 = vmul.f32 0.125, %v3540_v12 }
 0x534   :  { %v685_v18 = vmul.f32 0.125, %v670_v13  ;;  %v3541_v20 = vpop.f32.mrb[10].mxu1 }
 0x535   :  { %v673_v21 = vpop.f32.mrb[11].mxu1  ;;  %v688_v24 = vmul.f32 0.125, %v3541_v20  ;;  %v691_v27 = vadd.f32 %v687_v16, %v4270_v63  ;;  %v3721_v20 = vld [vmem:[%s5032_s6 + $0x28] sm:$0xff]  }
 0x536   :  { %v686_v22 = vmul.f32 0.125, %v673_v21  ;;  %v689_v23 = vadd.f32 %v685_v18, %v4260_v57  ;;  %v3722_v21 = vld [vmem:[%s5032_s6 + $0x30] sm:$0xff]  }
 0x537   :  { %v699_v29 = vsel %vm508_vm1, %v691_v27, -inf  ;;  %v692_v30 = vadd.f32 %v688_v24, %v4276_v3 }
 0x538   :  { %v693_v25 = vsel %vm508_vm1, %v689_v23, -inf  ;;  %v690_v26 = vadd.f32 %v686_v22, %v4265_v62  ;;  %v3723_v22 = vld [vmem:[%s5032_s6 + $0x38] sm:$0xff]  }
 0x539   :  { %694 = vmax.xlane.f32.xlu0 %v693_v25  ;;  %v702_v32 = vsel %vm508_vm1, %v692_v30, -inf }
 0x53a   :  { %v696_v28 = vsel %vm508_vm1, %v690_v26, -inf }
 0x53b   :  { %697 = vmax.xlane.f32.xlu1 %v696_v28 }
 0x53d   :  { %700 = vmax.xlane.f32.xlu0 %v699_v29 }
 0x541   :  { %703 = vmax.xlane.f32.xlu0 %v702_v32  ;;  %v3726_v32 = vld [vmem:[%s5032_s6 + $0x10] sm:$0xff]  }
 0x5c6   :  { %v695_v57 = vpop.xlane.xlu0 %694 }
 0x5c7   :  { %v705_v34 = vsub.f32 %v689_v23, %v695_v57  ;;  %v3724_v23 = vld [vmem:[%s5032_s6] sm:$0xff]   ;;  %v3727_v57 = vld [vmem:[%s5032_s6 + $0x18] sm:$0xff]  }
 0x5c8   :  { %v698_v35 = vpop.xlane.xlu1 %697 }
 0x5c9   :  { %v709_v62 = vmul.f32 1.442695, %v705_v34  ;;  %v706_v38 = vsub.f32 %v690_v26, %v698_v35 }
 0x5ca   :  { %v701_v36 = vpop.xlane.xlu0 %700 }
 0x5cb   :  { %v707_v37 = vsub.f32 %v691_v27, %v701_v36  ;;  %v711_v42 = vmul.f32 1.442695, %v706_v38 }
 0x5cd   :  { %v713_v63 = vmul.f32 1.442695, %v707_v37 }
 0x5ce   :  { %v704_v40 = vpop.xlane.xlu0 %703 }
 0x5cf   :  { %3880 = vpow2.f32 %v713_v63  ;;  %v708_v41 = vsub.f32 %v692_v30, %v704_v40  ;;  %v3725_v30 = vld [vmem:[%s5032_s6 + $0x8] sm:$0xff]  }
 0x5d0   :  { %3882 = vpow2.f32 %v709_v62 }
 0x5d1   :  { %v715_v44 = vmul.f32 1.442695, %v708_v41  ;;  %v3730_v41 = vld [vmem:[%s5034_s10 + $0x4] ss:$8 sps:$4 sm:$0xff]  }
 0x5d2   :  { %1153 = vmatprep.subr.bf16.mxu1 %v3730_v41 }
 0x5d3   :  { %3884 = vpow2.f32 %v715_v44 }
 0x5d4   :  { %3886 = vpow2.f32 %v711_v42 }
 0x5d9   :  { %v3881_v3 = vpop.eup %3880 }
 0x5da   :  { %v723_v46 = vsel %vm508_vm1, %v3881_v3, 0.0  ;;  %v3883_v47 = vpop.eup %3882 }
 0x5db   :  { %724 = vadd.xlane.f32.xlu0 %v723_v46  ;;  %v717_v49 = vsel %vm508_vm1, %v3883_v47, 0.0 }
 0x5dd   :  { %v3885_v48 = vpop.eup %3884 }
 0x5de   :  { %v726_v50 = vsel %vm508_vm1, %v3885_v48, 0.0  ;;  %v3887_v31 = vpop.eup %3886 }
 0x5df   :  { %718 = vadd.xlane.f32.xlu0 %v717_v49  ;;  %727 = vadd.xlane.f32.xlu1 %v726_v50  ;;  %v720_v51 = vsel %vm508_vm1, %v3887_v31, 0.0 }
 0x5e3   :  { %721 = vadd.xlane.f32.xlu1 %v720_v51 }
 0x5f4   :  { %743 = vrot.lane.b32.xlu1 %v4243_v43, %s3997_s28 }
 0x5f5   :  { %741 = vrot.lane.b32.xlu0 %v4245_v45, %s3997_s28 }
 0x668   :  { %v725_v53 = vpop.xlane.xlu0 %724 }
 0x66c   :  { %v719_v33 = vpop.xlane.xlu0 %718  ;;  %v728_v54 = vpop.xlane.xlu1 %727 }
 0x66d   :  { %3888 = vrcp.f32 %v728_v54 }
 0x66e   :  { %3890 = vrcp.f32 %v719_v33 }
 0x66f   :  { %3892 = vrcp.f32 %v725_v53 }
 0x670   :  { %v742_v55 = vpop.permute.xlu0 %741  ;;  %v722_v52 = vpop.xlane.xlu1 %721 }
 0x671   :  { %3894 = vrcp.f32 %v722_v52  ;;  %3542 = vmatprep.subr.bf16.mxu0 %v742_v55  ;;  %v3736_v52 = vld [vmem:[%s5034_s10 + $0x24] ss:$8 sps:$4 sm:$0xff]  }
 0x672   :  { %3543 = vmatpush3.bf16.msra.mxu0 %v742_v55 }
 0x674   :  { %v744_v58 = vpop.permute.xlu1 %743 }
 0x675   :  { %3544 = vmatprep.subr.bf16.mxu0 %v744_v58 }
 0x676   :  { %3545 = vmatpush3.bf16.msra.mxu0 %v744_v58  ;;  %v3739_v58 = vld [vmem:[%s5034_s10 + $0x34] ss:$8 sps:$4 sm:$0xff]  }
 0x677   :  { %3550 = vmatprep.subr.bf16.mxu0 %v3720_v56  ;;  %v3889_v43 = vpop.eup %3888 }
 0x678   :  { %v3891_v45 = vpop.eup %3890  ;;  %v736_v61 = vmul.f32 %v3889_v43, %v3885_v48  ;;  %v3737_v43 = vld [vmem:[%s5034_s10 + $0x30] ss:$8 sps:$4 sm:$0xff]  }
 0x679   :  { %v3893_v59 = vpop.eup %3892  ;;  %v733_v0 = vmul.f32 %v3891_v45, %v3883_v47  ;;  %v3742_v45 = vld [vmem:[%s5034_s10 + $0x44] ss:$8 sps:$4 sm:$0xff]  }
 0x67a   :  { %v735_v13 = vmul.f32 %v3893_v59, %v3881_v3  ;;  %v3740_v59 = vld [vmem:[%s5034_s10 + $0x40] ss:$8 sps:$4 sm:$0xff]  }
 0x67b   :  { %v3895_v60 = vpop.eup %3894 }
 0x67c   :  { %v734_v12 = vmul.f32 %v3895_v60, %v3887_v31  ;;  %v738_v18 = vpack.c.bf16 %v736_v61, %v735_v13  ;;  %v3745_v60 = vld [vmem:[%s5034_s10 + $0x54] ss:$8 sps:$4 sm:$0xff]   ;;  %v3743_v61 = vld [vmem:[%s5034_s10 + $0x50] ss:$8 sps:$4 sm:$0xff]  }
 0x67d   :  { %v3751_v13 = vld [vmem:[%s5034_s10 + $0x74] ss:$8 sps:$4 sm:$0xff]  }
 0x67e   :  { %v737_v16 = vpack.c.bf16 %v734_v12, %v733_v0  ;;  %v3748_v0 = vld [vmem:[%s5034_s10 + $0x64] ss:$8 sps:$4 sm:$0xff]   ;;  %v3746_v12 = vld [vmem:[%s5034_s10 + $0x60] ss:$8 sps:$4 sm:$0xff]  }
 0x680   :  { %3546 = vmatprep.mubr.msk.bf16.mxu0 %vm508_vm1, %v737_v16  ;;  %v3749_v16 = vld [vmem:[%s5034_s10 + $0x70] ss:$8 sps:$4 sm:$0xff]  }
 0x681   :  { %3547 = vmatmul.mubr.msk.bf16.vlgmr.msra.gmra.mrb[12].mxu0 %vm508_vm1, %v738_v18 }
 0x682   :  { %3551 = vmatpush3.bf16.msra.mxu0 %v3720_v56  ;;  %v3734_v56 = vld [vmem:[%s5034_s10 + $0x20] ss:$8 sps:$4 sm:$0xff]  }
 0x683   :  { %3552 = vmatprep.subr.bf16.mxu0 %v3721_v20 }
 0x686   :  { %3553 = vmatpush3.bf16.msra.mxu0 %v3721_v20 }
 0x687   :  { %3554 = vmatprep.subr.bf16.mxu0 %v3722_v21 }
 0x68a   :  { %3555 = vmatpush3.bf16.msra.mxu0 %v3722_v21 }
 0x68b   :  { %3556 = vmatprep.subr.bf16.mxu0 %v3723_v22 }
 0x68e   :  { %3557 = vmatpush3.bf16.msra.mxu0 %v3723_v22 }
 0x68f   :  { %3562 = vmatprep.subr.bf16.mxu0 %v3724_v23 }
 0x754   :  { %v3548_v24 = vpop.f32.mrb[12].mxu0 }
 0x755   :  { %v787_v25 = vpop.f32.mrb[13].mxu0 }
 0x756   :  { %v3549_v26 = vpop.f32.mrb[14].mxu0 }
 0x757   :  { %v803_v27 = vpack.c.bf16 %v3549_v26, %v3548_v24  ;;  %v790_v28 = vpop.f32.mrb[15].mxu0 }
 0x758   :  { %v802_v29 = vpack.c.bf16 %v790_v28, %v787_v25 }
 0x75a   :  { %3558 = vmatprep.mubr.msk.bf16.mxu0 %vm438_vm0, %v802_v29 }
 0x75b   :  { %3559 = vmatmul.mubr.msk.bf16.vlgmr.msra.gmra.mrb[16].mxu0 %vm438_vm0, %v803_v27 }
 0x75c   :  { %3563 = vmatpush3.bf16.msra.mxu0 %v3724_v23  ;;  %3570 = vmatprep.mubr.msk.bf16.mxu0 %vm438_vm0, %v610_v9 }
 0x75d   :  { %3564 = vmatprep.subr.bf16.mxu0 %v3725_v30 }
 0x760   :  { %3565 = vmatpush3.bf16.msra.mxu0 %v3725_v30 }
 0x761   :  { %3566 = vmatprep.subr.bf16.mxu0 %v3726_v32 }
 0x764   :  { %3567 = vmatpush3.bf16.msra.mxu0 %v3726_v32 }
 0x765   :  { %3568 = vmatprep.subr.bf16.mxu0 %v3727_v57 }
 0x768   :  { %3569 = vmatpush3.bf16.msra.mxu0 %v3727_v57  ;;  %v3124_v57 = vld [vmem:[%s5035_s8] ss:$0 sm:$0xff] }
 0x76b   :  { %3571 = vmatmul.mubr.msk.bf16.vlgmr.msra.gmra.mrb[16].mxu0 %vm438_vm0, %v611_v7  ;;  %v3728_v7 = vld [vmem:[%s5034_s10] ss:$8 sps:$4 sm:$0xff]  }
 0x76c   :  { %1154 = vmatpush1.bf16.msra.mxu1 %v3728_v7 }
 0x83e   :  { %v3572_v8 = vpop.f32.mrb[16].mxu0 }
 0x83f   :  { %v947_v9 = vpop.f32.mrb[17].mxu0  ;;  %v971_v63 = vadd.f32 %v3572_v8, %v3123_v2 }
 0x840   :  { %v969_v34 = vadd.f32 %v3123_v2, %v947_v9  ;;  %v3573_v35 = vpop.f32.mrb[18].mxu0 }
 0x841   :  { %v950_v36 = vpop.f32.mrb[19].mxu0  ;;  %v972_v37 = vadd.f32 %v3573_v35, %v3123_v2  ;;  %v975_v6 = vadd.f32 %v971_v63, %v4210_v10  ;;  %v3125_v35 = vld [vmem:[%s5036_s9] ss:$0 sm:$0xff] }
 0x842   :  { %v970_v62 = vadd.f32 %v3123_v2, %v950_v36  ;;  %v973_v38 = vadd.f32 %v969_v34, %v4203_v4  ;;  %v3731_v4 = vld [vmem:[%s5034_s10 + $0x10] ss:$8 sps:$4 sm:$0xff]  }
 0x843   :  { %v976_v1 = vadd.f32 %v972_v37, %v4212_v11 }
 0x844   :  { %979 = vadd.xlane.f32.xlu1 %v973_v38  ;;  %v974_v40 = vadd.f32 %v970_v62, %v4205_v5  ;;  %v3733_v5 = vld [vmem:[%s5034_s10 + $0x14] ss:$8 sps:$4 sm:$0xff]  }
 0x845   :  { %1155 = vmatprep.subr.bf16.mxu1 %v3733_v5 }
 0x846   :  { %981 = vadd.xlane.f32.xlu0 %v974_v40  ;;  %1156 = vmatpush1.bf16.msra.mxu1 %v3731_v4 }
 0x847   :  { %1157 = vmatprep.subr.bf16.mxu1 %v3736_v52  ;;  %v3767_v52 = vld [vmem:[%s5037_s12 + $0x38] sm:$0xff]  }
 0x848   :  { %985 = vadd.xlane.f32.xlu1 %v976_v1 }
 0x84a   :  { %983 = vadd.xlane.f32.xlu0 %v975_v6  ;;  %1158 = vmatpush1.bf16.msra.mxu1 %v3734_v56  ;;  %v1061_v56 = vld [vmem:[%s5038_s11] sm:$0x3] }
 0x84b   :  { %1159 = vmatprep.subr.bf16.mxu1 %v3739_v58  ;;  %v1066_v58 = vrot.slane %v1061_v56, %v4220_v15 }
 0x84e   :  { %1160 = vmatpush1.bf16.msra.mxu1 %v3737_v43  ;;  %v1070_v43 = vrot.slane %v1061_v56, %v4226_v17 }
 0x84f   :  { %1161 = vmatprep.subr.bf16.mxu1 %v3742_v45 }
 0x852   :  { %1162 = vmatpush1.bf16.msra.mxu1 %v3740_v59 }
 0x853   :  { %1163 = vmatprep.subr.bf16.mxu1 %v3745_v60 }
 0x856   :  { %1164 = vmatpush1.bf16.msra.mxu1 %v3743_v61 }
 0x857   :  { %1165 = vmatprep.subr.bf16.mxu1 %v3748_v0 }
 0x85a   :  { %1166 = vmatpush1.bf16.msra.mxu1 %v3746_v12 }
 0x85b   :  { %1167 = vmatprep.subr.bf16.mxu1 %v3751_v13 }
 0x85e   :  { %1168 = vmatpush1.bf16.msra.mxu1 %v3749_v16 }
 0x8d1   :  { %v980_v10 = vpop.xlane.xlu1 %979 }
 0x8d2   :  { %v987_v11 = vmul.f32 0.0078125, %v980_v10 }
 0x8d3   :  { %v982_v42 = vpop.xlane.xlu0 %981 }
 0x8d4   :  { %v991_v44 = vsub.f32 %v973_v38, %v987_v11  ;;  %v988_v3 = vmul.f32 0.0078125, %v982_v42  ;;  %v3752_v11 = vld [vmem:[%s5037_s12 + $0x40] sm:$0xff]  }
 0x8d5   :  { %v986_v46 = vpop.xlane.xlu1 %985  ;;  %v3753_v42 = vld [vmem:[%s5037_s12] sm:$0xff]   ;;  %3394 = vmatprep.subr.bf16.mxu0 %v3752_v11 }
 0x8d6   :  { %v992_v47 = vsub.f32 %v974_v40, %v988_v3  ;;  %v990_v48 = vmul.f32 0.0078125, %v986_v46  ;;  %v995_v49 = vmul.f32 %v991_v44, %v991_v44  ;;  %3395 = vmatpush3.bf16.msra.mxu0 %v3753_v42  ;;  %v3755_v3 = vld [vmem:[%s5037_s12 + $0x8] sm:$0xff]   ;;  %v3756_v46 = vld [vmem:[%s5037_s12 + $0x50] sm:$0xff]  }
 0x8d7   :  { %v984_v50 = vpop.xlane.xlu0 %983 }
 0x8d8   :  { %v4388_v31 = vsub.f32 %v976_v1, %v990_v48  ;;  %v989_v51 = vmul.f32 0.0078125, %v984_v50  ;;  %999 = vadd.xlane.f32.xlu0 %v995_v49  ;;  %v996_v53 = vmul.f32 %v992_v47, %v992_v47  ;;  %v3758_v48 = vld [vmem:[%s5037_s12 + $0x58] sm:$0xff]   ;;  %v3760_v50 = vld [vmem:[%s5037_s12 + $0x60] sm:$0xff]  }
 0x8d9   :  { %v3759_v49 = vld [vmem:[%s5037_s12 + $0x18] sm:$0xff]  }
 0x8da   :  { %v993_v33 = vsub.f32 %v975_v6, %v989_v51  ;;  %1001 = vadd.xlane.f32.xlu1 %v996_v53  ;;  %v998_v54 = vmul.f32 %v4388_v31, %v4388_v31  ;;  %v3762_v51 = vld [vmem:[%s5037_s12 + $0x68] sm:$0xff]  }
 0x8db   :  { %v3763_v53 = vld [vmem:[%s5037_s12 + $0x28] sm:$0xff]  }
 0x8dc   :  { %v997_v55 = vmul.f32 %v993_v33, %v993_v33 }
 0x8de   :  { %1005 = vadd.xlane.f32.xlu1 %v998_v54  ;;  %1003 = vadd.xlane.f32.xlu0 %v997_v55  ;;  %v3765_v54 = vld [vmem:[%s5037_s12 + $0x30] sm:$0xff]   ;;  %v3766_v55 = vld [vmem:[%s5037_s12 + $0x78] sm:$0xff]  }
 0x965   :  { %v1000_v18 = vpop.xlane.xlu0 %999 }
 0x966   :  { %v1007_v20 = vmul.f32 0.0078125, %v1000_v18 }
 0x967   :  { %v1002_v21 = vpop.xlane.xlu1 %1001 }
 0x968   :  { %v1011_v22 = vadd.f32 1e-12, %v1007_v20  ;;  %v1008_v23 = vmul.f32 0.0078125, %v1002_v21 }
 0x96a   :  { %3896 = vrsqrt.f32 %v1011_v22  ;;  %v1012_v24 = vadd.f32 1e-12, %v1008_v23 }
 0x96b   :  { %v1006_v25 = vpop.xlane.xlu1 %1005  ;;  %v1004_v26 = vpop.xlane.xlu0 %1003 }
 0x96c   :  { %3898 = vrsqrt.f32 %v1012_v24  ;;  %v1010_v27 = vmul.f32 0.0078125, %v1006_v25  ;;  %v1009_v28 = vmul.f32 0.0078125, %v1004_v26 }
 0x96e   :  { %v1014_v29 = vadd.f32 1e-12, %v1010_v27  ;;  %v1013_v30 = vadd.f32 1e-12, %v1009_v28 }
 0x970   :  { %3900 = vrsqrt.f32 %v1014_v29 }
 0x971   :  { %3902 = vrsqrt.f32 %v1013_v30 }
 0x974   :  { %v3897_v32 = vpop.eup %3896 }
 0x975   :  { %v1019_v2 = vmul.f32 %v3897_v32, %v991_v44  ;;  %v3754_v44 = vld [vmem:[%s5037_s12 + $0x48] sm:$0xff]  }
 0x976   :  { %v3899_v8 = vpop.eup %3898  ;;  %3396 = vmatprep.subr.bf16.mxu0 %v3754_v44 }
 0x977   :  { %v1020_v9 = vmul.f32 %v3899_v8, %v992_v47  ;;  %v1029_v34 = vmul.f32 %v3124_v57, %v1019_v2  ;;  %3397 = vmatpush3.bf16.msra.mxu0 %v3755_v3  ;;  %v3757_v47 = vld [vmem:[%s5037_s12 + $0x10] sm:$0xff]  }
 0x978   :  { %3398 = vmatprep.subr.bf16.mxu0 %v3756_v46 }
 0x979   :  { %v1030_v36 = vmul.f32 %v3124_v57, %v1020_v9  ;;  %v4434_v38 = vadd.f32 %v3125_v35, %v1029_v34 }
 0x97a   :  { %v3901_v37 = vpop.eup %3900 }
 0x97b   :  { %v3903_v62 = vpop.eup %3902  ;;  %v4436_v63 = vadd.f32 %v3125_v35, %v1030_v36  ;;  %v1022_v40 = vmul.f32 %v3901_v37, %v4388_v31  ;;  %3399 = vmatpush3.bf16.msra.mxu0 %v3757_v47  ;;  %v3761_v31 = vld [vmem:[%s5037_s12 + $0x20] sm:$0xff]  }
 0x97c   :  { %v1021_v1 = vmul.f32 %v3903_v62, %v993_v33  ;;  %3400 = vmatprep.subr.bf16.mxu0 %v3758_v48  ;;  %v3764_v33 = vld [vmem:[%s5037_s12 + $0x70] sm:$0xff]  }
 0x97d   :  { %v1059_v6 = vpack.c.bf16 %v4436_v63, %v4434_v38  ;;  %v1032_v7 = vmul.f32 %v3124_v57, %v1022_v40 }
 0x97e   :  { %v1031_v41 = vmul.f32 %v3124_v57, %v1021_v1 }
 0x97f   :  { %1186 = vmatmul.mubr.bf16.vlgmr.msra.gmra.mrb[12].mxu1 %v1059_v6  ;;  %v4444_v5 = vadd.f32 %v3125_v35, %v1032_v7  ;;  %3401 = vmatpush3.bf16.msra.mxu0 %v3759_v49 }
 0x980   :  { %1195 = vmatprep.mubr.bf16.mxu1 %v3996_v39  ;;  %v4442_v4 = vadd.f32 %v3125_v35, %v1031_v41  ;;  %3402 = vmatprep.subr.bf16.mxu0 %v3760_v50 }
 0x982   :  { %v1060_v10 = vpack.c.bf16 %v4444_v5, %v4442_v4 }
 0x983   :  { %3403 = vmatpush3.bf16.msra.mxu0 %v3761_v31 }
 0x984   :  { %3404 = vmatprep.subr.bf16.mxu0 %v3762_v51 }
 0x987   :  { %1196 = vmatmul.mubr.bf16.gmra.mrb[16].mxu1 %v1060_v10  ;;  %3405 = vmatpush3.bf16.msra.mxu0 %v3763_v53 }
 0x988   :  { %1749 = vmatprep.mubr.bf16.mxu1 %v3996_v39  ;;  %3406 = vmatprep.subr.bf16.mxu0 %v3764_v33 }
 0x98b   :  { %3407 = vmatpush3.bf16.msra.mxu0 %v3765_v54 }
 0x98c   :  { %3408 = vmatprep.subr.bf16.mxu0 %v3766_v55 }
 0x98f   :  { %3409 = vmatpush3.bf16.msra.mxu0 %v3767_v52 }
 0xa52   :  { %v1187_v45 = vpop.f32.mrb[12].mxu1 }
 0xa53   :  { %v4502_v59 = vadd.f32 %v1187_v45, %v1066_v58  ;;  %v1189_v60 = vpop.f32.mrb[13].mxu1 }
 0xa54   :  { %v4504_v61 = vadd.f32 %v1189_v60, %v1070_v43  ;;  %v1191_v0 = vpop.f32.mrb[14].mxu1 }
 0xa55   :  { %v1214_v12 = vmul.f32 0.044715, %v4502_v59  ;;  %v4507_v13 = vadd.f32 %v1191_v0, %v1066_v58  ;;  %v1193_v16 = vpop.f32.mrb[15].mxu1 }
 0xa56   :  { %v1215_v18 = vmul.f32 0.044715, %v4504_v61  ;;  %v4510_v20 = vadd.f32 %v1193_v16, %v1070_v43 }
 0xa57   :  { %v1222_v21 = vmul.f32 %v1214_v12, %v4502_v59  ;;  %v1216_v22 = vmul.f32 0.044715, %v4507_v13 }
 0xa58   :  { %v1223_v23 = vmul.f32 %v1215_v18, %v4504_v61  ;;  %v1217_v24 = vmul.f32 0.044715, %v4510_v20 }
 0xa59   :  { %v1230_v25 = vmul.f32 %v1222_v21, %v4502_v59  ;;  %v1224_v26 = vmul.f32 %v1216_v22, %v4507_v13  ;;  %v1206_v22 = vmul.f32 0.5, %v4502_v59 }
 0xa5a   :  { %v1231_v27 = vmul.f32 %v1223_v23, %v4504_v61  ;;  %v1225_v28 = vmul.f32 %v1217_v24, %v4510_v20  ;;  %v1197_v29 = vpop.f32.mrb[16].mxu1  ;;  %v1208_v23 = vmul.f32 0.5, %v4507_v13 }
 0xa5b   :  { %v1238_v30 = vadd.f32 %v1230_v25, %v4502_v59  ;;  %v1232_v32 = vmul.f32 %v1224_v26, %v4507_v13  ;;  %v4522_v57 = vadd.f32 %v1197_v29, %v1066_v58  ;;  %v1199_v2 = vpop.f32.mrb[17].mxu1  ;;  %v1207_v25 = vmul.f32 0.5, %v4504_v61 }
 0xa5c   :  { %v1233_v8 = vmul.f32 %v1225_v28, %v4510_v20  ;;  %v4525_v9 = vadd.f32 %v1199_v2, %v1070_v43  ;;  %v1201_v34 = vpop.f32.mrb[18].mxu1  ;;  %v1239_v35 = vadd.f32 %v1231_v27, %v4504_v61  ;;  %v1209_v26 = vmul.f32 0.5, %v4510_v20 }
 0xa5d   :  { %v1246_v36 = vmul.f32 0.7978846, %v1238_v30  ;;  %v1240_v37 = vadd.f32 %v1232_v32, %v4507_v13  ;;  %v1218_v62 = vmul.f32 0.044715, %v4522_v57  ;;  %v1202_v40 = vadd.f32 %v1201_v34, %v1066_v58  ;;  %v1203_v1 = vpop.f32.mrb[19].mxu1 }
 0xa5e   :  { %v1219_v6 = vmul.f32 0.044715, %v4525_v9  ;;  %v1204_v7 = vadd.f32 %v1203_v1, %v1070_v43  ;;  %v1241_v41 = vadd.f32 %v1233_v8, %v4510_v20  ;;  %v1247_v10 = vmul.f32 0.7978846, %v1239_v35 }
 0xa5f   :  { %3904 = vtanh.f32 %v1246_v36  ;;  %v1248_v11 = vmul.f32 0.7978846, %v1240_v37  ;;  %v1226_v42 = vmul.f32 %v1218_v62, %v4522_v57  ;;  %v1220_v44 = vmul.f32 0.044715, %v1202_v40 }
 0xa60   :  { %v1227_v3 = vmul.f32 %v1219_v6, %v4525_v9  ;;  %v1221_v46 = vmul.f32 0.044715, %v1204_v7  ;;  %v1249_v47 = vmul.f32 0.7978846, %v1241_v41  ;;  %3906 = vtanh.f32 %v1247_v10 }
 0xa61   :  { %3908 = vtanh.f32 %v1248_v11  ;;  %v1234_v48 = vmul.f32 %v1226_v42, %v4522_v57  ;;  %v1228_v49 = vmul.f32 %v1220_v44, %v1202_v40  ;;  %v1210_v13 = vmul.f32 0.5, %v4522_v57 }
 0xa62   :  { %v1235_v50 = vmul.f32 %v1227_v3, %v4525_v9  ;;  %v1229_v31 = vmul.f32 %v1221_v46, %v1204_v7  ;;  %3910 = vtanh.f32 %v1249_v47  ;;  %v1212_v61 = vmul.f32 0.5, %v1202_v40 }
 0xa63   :  { %v1236_v51 = vmul.f32 %v1228_v49, %v1202_v40  ;;  %v1242_v53 = vadd.f32 %v1234_v48, %v4522_v57  ;;  %v1211_v20 = vmul.f32 0.5, %v4525_v9  ;;  %v1213_v6 = vmul.f32 0.5, %v1204_v7  ;;  %v3142_v48 = vld [vmem:[%s5039_s13] ss:$0 sm:$0xff] }
 0xa64   :  { %v1237_v33 = vmul.f32 %v1229_v31, %v1204_v7  ;;  %v1243_v54 = vadd.f32 %v1235_v50, %v4525_v9 }
 0xa65   :  { %v1244_v55 = vadd.f32 %v1236_v51, %v1202_v40  ;;  %v1250_v52 = vmul.f32 0.7978846, %v1242_v53 }
 0xa66   :  { %v1245_v56 = vadd.f32 %v1237_v33, %v1204_v7  ;;  %v1251_v58 = vmul.f32 0.7978846, %v1243_v54 }
 0xa67   :  { %v1252_v43 = vmul.f32 0.7978846, %v1244_v55  ;;  %3912 = vtanh.f32 %v1250_v52 }
 0xa68   :  { %v1253_v45 = vmul.f32 0.7978846, %v1245_v56  ;;  %3914 = vtanh.f32 %v1251_v58 }
 0xa69   :  { %v3905_v60 = vpop.eup %3904  ;;  %3916 = vtanh.f32 %v1252_v43 }
 0xa6a   :  { %v3907_v0 = vpop.eup %3906  ;;  %v1262_v12 = vadd.f32 1.0, %v3905_v60  ;;  %3918 = vtanh.f32 %v1253_v45 }
 0xa6b   :  { %v3909_v16 = vpop.eup %3908  ;;  %v1263_v18 = vadd.f32 1.0, %v3907_v0 }
 0xa6c   :  { %v3911_v21 = vpop.eup %3910  ;;  %v1264_v24 = vadd.f32 1.0, %v3909_v16  ;;  %v1270_v28 = vmul.f32 %v1262_v12, %v1206_v22  ;;  %v3773_v12 = vld [vmem:[%s5051_s23 + $0xdc] ss:$12 sps:$4 sm:$0xff]  }
 0xa6d   :  { %v1265_v27 = vadd.f32 1.0, %v3911_v21  ;;  %v1271_v30 = vmul.f32 %v1263_v18, %v1207_v25 }
 0xa6e   :  { %v1272_v29 = vmul.f32 %v1264_v24, %v1208_v23 }
 0xa6f   :  { %v1273_v32 = vmul.f32 %v1265_v27, %v1209_v26 }
 0xa70   :  { %v1310_v2 = vpack.c.bf16 %v1272_v29, %v1270_v28 }
 0xa71   :  { %v3913_v8 = vpop.eup %3912  ;;  %v1311_v34 = vpack.c.bf16 %v1273_v32, %v1271_v30 }
 0xa72   :  { %v3915_v35 = vpop.eup %3914  ;;  %v1266_v36 = vadd.f32 1.0, %v3913_v8 }
 0xa73   :  { %v3917_v37 = vpop.eup %3916  ;;  %1449 = vmatprep.mubr.bf16.mxu0 %v1311_v34  ;;  %v1267_v59 = vadd.f32 1.0, %v3915_v35  ;;  %v3776_v34 = vld [vmem:[%s5051_s23 + $0xf4] ss:$12 sps:$4 sm:$0xff]  }
 0xa74   :  { %v3919_v62 = vpop.eup %3918  ;;  %1450 = vmatmul.mubr.bf16.vlgmr.msra.gmra.mrb[20].mxu0 %v1310_v2  ;;  %v1268_v1 = vadd.f32 1.0, %v3917_v37  ;;  %v1274_v10 = vmul.f32 %v1266_v36, %v1210_v13  ;;  %v3777_v35 = vld [vmem:[%s5051_s23 + $0xc8] ss:$12 sps:$4 sm:$0xff]   ;;  %v3774_v36 = vld [vmem:[%s5051_s23 + $0xf0] ss:$12 sps:$4 sm:$0xff]  }
 0xa75   :  { %v1269_v41 = vadd.f32 1.0, %v3919_v62  ;;  %v1275_v42 = vmul.f32 %v1267_v59, %v1211_v20  ;;  %3574 = vmatprep.subr.bf16.mxu0 %v3777_v35  ;;  %v3780_v37 = vld [vmem:[%s5051_s23 + $0x10c] ss:$12 sps:$4 sm:$0xff]   ;;  %v3778_v62 = vld [vmem:[%s5051_s23 + $0x108] ss:$12 sps:$4 sm:$0xff]  }
 0xa76   :  { %v1276_v11 = vmul.f32 %v1268_v1, %v1212_v61  ;;  %3575 = vmatpush3.bf16.msra.mxu0 %v3777_v35  ;;  %v3781_v59 = vld [vmem:[%s5051_s23 + $0xe0] ss:$12 sps:$4 sm:$0xff]   ;;  %v3784_v13 = vld [vmem:[%s5051_s23 + $0x124] ss:$12 sps:$4 sm:$0xff]   ;;  %v3788_v20 = vld [vmem:[%s5051_s23 + $0x13c] ss:$12 sps:$4 sm:$0xff]  }
 0xa77   :  { %v1277_v44 = vmul.f32 %v1269_v41, %v1213_v6  ;;  %3576 = vmatprep.subr.bf16.mxu0 %v3781_v59  ;;  %v3785_v61 = vld [vmem:[%s5051_s23 + $0xf8] ss:$12 sps:$4 sm:$0xff]   ;;  %v3782_v1 = vld [vmem:[%s5051_s23 + $0x120] ss:$12 sps:$4 sm:$0xff]   ;;  %v3789_v6 = vld [vmem:[%s5051_s23 + $0x110] ss:$12 sps:$4 sm:$0xff]  }
 0xa78   :  { %v1312_v3 = vpack.c.bf16 %v1276_v11, %v1274_v10  ;;  %v3786_v41 = vld [vmem:[%s5051_s23 + $0x138] ss:$12 sps:$4 sm:$0xff]   ;;  %v3792_v10 = vld [vmem:[%s5051_s23 + $0x154] ss:$12 sps:$4 sm:$0xff]  }
 0xa79   :  { %v1313_v46 = vpack.c.bf16 %v1277_v44, %v1275_v42  ;;  %v3793_v11 = vld [vmem:[%s5051_s23 + $0x128] ss:$12 sps:$4 sm:$0xff]   ;;  %v3790_v42 = vld [vmem:[%s5051_s23 + $0x150] ss:$12 sps:$4 sm:$0xff]   ;;  %v3796_v44 = vld [vmem:[%s5051_s23 + $0x16c] ss:$12 sps:$4 sm:$0xff]  }
 0xa7a   :  { %3577 = vmatpush3.bf16.msra.mxu0 %v3781_v59 }
 0xa7b   :  { %1457 = vmatprep.mubr.bf16.mxu0 %v1313_v46  ;;  %3578 = vmatprep.subr.bf16.mxu0 %v3785_v61  ;;  %v3794_v46 = vld [vmem:[%s5051_s23 + $0x168] ss:$12 sps:$4 sm:$0xff]  }
 0xa7c   :  { %1458 = vmatmul.mubr.bf16.gmra.mrb[24].mxu0 %v1312_v3  ;;  %v3797_v3 = vld [vmem:[%s5051_s23 + $0x140] ss:$12 sps:$4 sm:$0xff]  }
 0xa7e   :  { %3579 = vmatpush3.bf16.msra.mxu0 %v3785_v61 }
 0xa7f   :  { %3580 = vmatprep.subr.bf16.mxu0 %v3789_v6 }
 0xa82   :  { %3581 = vmatpush3.bf16.msra.mxu0 %v3789_v6 }
 0xa83   :  { %3582 = vmatprep.subr.bf16.mxu0 %v3793_v11 }
 0xa86   :  { %3583 = vmatpush3.bf16.msra.mxu0 %v3793_v11 }
 0xa87   :  { %3584 = vmatprep.subr.bf16.mxu0 %v3797_v3 }
 0xa8a   :  { %3585 = vmatpush3.bf16.msra.mxu0 %v3797_v3 }
 0xb47   :  { %v3410_v47 = vpop.f32.mrb[20].mxu0 }
 0xb48   :  { %v3411_v57 = vpop.f32.mrb[21].mxu0 }
 0xb49   :  { %v3412_v40 = vadd.f32 %v3411_v57, %v3410_v47  ;;  %v3413_v49 = vpop.f32.mrb[22].mxu0  ;;  %v3798_v47 = vld [vmem:[%s5051_s23 + $0x158] ss:$12 sps:$4 sm:$0xff]  }
 0xb4a   :  { %v3414_v50 = vpop.f32.mrb[23].mxu0  ;;  %3586 = vmatprep.subr.bf16.mxu0 %v3798_v47 }
 0xb4b   :  { %v1452_v9 = vadd.f32 %v3412_v40, %v3142_v48  ;;  %v3415_v7 = vadd.f32 %v3414_v50, %v3413_v49  ;;  %3587 = vmatpush3.bf16.msra.mxu0 %v3798_v47 }
 0xb4d   :  { %v1455_v31 = vadd.f32 %v3415_v7, %v3142_v48  ;;  %v1466_v51 = vadd.f32 %v1452_v9, %v4434_v38  ;;  %v3768_v38 = vld [vmem:[%s5051_s23 + $0xc0] ss:$12 sps:$4 sm:$0xff]  }
 0xb4f   :  { %1472 = vadd.xlane.f32.xlu0 %v1466_v51  ;;  %v3416_v53 = vpop.f32.mrb[24].mxu0  ;;  %v1467_v33 = vadd.f32 %v1455_v31, %v4436_v63  ;;  %v3770_v63 = vld [vmem:[%s5051_s23 + $0xc4] ss:$12 sps:$4 sm:$0xff]  }
 0xb50   :  { %v3417_v54 = vpop.f32.mrb[25].mxu0  ;;  %1717 = vmatprep.subr.bf16.mxu1 %v3770_v63 }
 0xb51   :  { %v3418_v55 = vadd.f32 %v3417_v54, %v3416_v53  ;;  %1474 = vadd.xlane.f32.xlu1 %v1467_v33  ;;  %v3419_v52 = vpop.f32.mrb[26].mxu0  ;;  %1718 = vmatpush1.bf16.msra.mxu1 %v3768_v38 }
 0xb52   :  { %v3420_v56 = vpop.f32.mrb[27].mxu0  ;;  %1719 = vmatprep.subr.bf16.mxu1 %v3773_v12 }
 0xb53   :  { %v1460_v58 = vadd.f32 %v3418_v55, %v3142_v48  ;;  %v3421_v43 = vadd.f32 %v3420_v56, %v3419_v52  ;;  %v3159_v56 = vld [vmem:[%s5040_s14] ss:$0 sm:$0xff] }
 0xb55   :  { %v1463_v45 = vadd.f32 %v3421_v43, %v3142_v48  ;;  %v1468_v60 = vadd.f32 %v1460_v58, %v4442_v4  ;;  %v3771_v4 = vld [vmem:[%s5051_s23 + $0xd8] ss:$12 sps:$4 sm:$0xff]   ;;  %v3799_v48 = vld [vmem:[%s5051_s23 + $0x170] ss:$12 sps:$4 sm:$0xff]  }
 0xb56   :  { %1720 = vmatpush1.bf16.msra.mxu1 %v3771_v4  ;;  %3588 = vmatprep.subr.bf16.mxu0 %v3799_v48 }
 0xb57   :  { %1476 = vadd.xlane.f32.xlu0 %v1468_v60  ;;  %v1469_v0 = vadd.f32 %v1463_v45, %v4444_v5  ;;  %1721 = vmatprep.subr.bf16.mxu1 %v3776_v34 }
 0xb58   :  { %3589 = vmatpush3.bf16.msra.mxu0 %v3799_v48 }
 0xb59   :  { %1478 = vadd.xlane.f32.xlu1 %v1469_v0 }
 0xb5a   :  { %1722 = vmatpush1.bf16.msra.mxu1 %v3774_v36 }
 0xb5b   :  { %1723 = vmatprep.subr.bf16.mxu1 %v3780_v37 }
 0xb5e   :  { %1724 = vmatpush1.bf16.msra.mxu1 %v3778_v62 }
 0xb5f   :  { %1725 = vmatprep.subr.bf16.mxu1 %v3784_v13 }
 0xb62   :  { %1726 = vmatpush1.bf16.msra.mxu1 %v3782_v1 }
 0xb63   :  { %1727 = vmatprep.subr.bf16.mxu1 %v3788_v20 }
 0xb66   :  { %1728 = vmatpush1.bf16.msra.mxu1 %v3786_v41 }
 0xb67   :  { %1729 = vmatprep.subr.bf16.mxu1 %v3792_v10 }
 0xb6a   :  { %1730 = vmatpush1.bf16.msra.mxu1 %v3790_v42 }
 0xb6b   :  { %1731 = vmatprep.subr.bf16.mxu1 %v3796_v44 }
 0xb6e   :  { %1732 = vmatpush1.bf16.msra.mxu1 %v3794_v46 }
 0xbdc   :  { %v1473_v5 = vpop.xlane.xlu0 %1472 }
 0xbdd   :  { %v1480_v16 = vmul.f32 0.0078125, %v1473_v5 }
 0xbde   :  { %v1475_v18 = vpop.xlane.xlu1 %1474 }
 0xbdf   :  { %v4563_v21 = vsub.f32 %v1466_v51, %v1480_v16  ;;  %v1481_v22 = vmul.f32 0.0078125, %v1475_v18 }
 0xbe1   :  { %v4565_v23 = vsub.f32 %v1467_v33, %v1481_v22  ;;  %v1488_v24 = vmul.f32 %v4563_v21, %v4563_v21 }
 0xbe3   :  { %1492 = vadd.xlane.f32.xlu0 %v1488_v24  ;;  %v1489_v25 = vmul.f32 %v4565_v23, %v4565_v23 }
 0xbe4   :  { %v1477_v26 = vpop.xlane.xlu0 %1476 }
 0xbe5   :  { %v1482_v27 = vmul.f32 0.0078125, %v1477_v26  ;;  %1494 = vadd.xlane.f32.xlu1 %v1489_v25 }
 0xbe6   :  { %v1479_v28 = vpop.xlane.xlu1 %1478 }
 0xbe7   :  { %v4571_v29 = vsub.f32 %v1468_v60, %v1482_v27  ;;  %v1483_v30 = vmul.f32 0.0078125, %v1479_v28  ;;  %v3193_v27 = vld [vmem:[%s5030_s5 + $0x3] sm:$0x7] }
 0xbe8   :  { %v1577_v28 = vrot.slane %v3193_v27, %v4220_v15  ;;  %v1585_v13 = vrot.slane %v3193_v27, %v181_v19 }
 0xbe9   :  { %v4573_v32 = vsub.f32 %v1469_v0, %v1483_v30  ;;  %v1490_v2 = vmul.f32 %v4571_v29, %v4571_v29  ;;  %v3160_v0 = vld [vmem:[%s5041_s15] ss:$0 sm:$0xff]  ;;  %v1581_v30 = vrot.slane %v3193_v27, %v4226_v17 }
 0xbeb   :  { %1496 = vadd.xlane.f32.xlu0 %v1490_v2  ;;  %v1491_v8 = vmul.f32 %v4573_v32, %v4573_v32 }
 0xbed   :  { %1498 = vadd.xlane.f32.xlu1 %v1491_v8 }
 0xc70   :  { %v1493_v57 = vpop.xlane.xlu0 %1492 }
 0xc71   :  { %v1500_v40 = vmul.f32 0.0078125, %v1493_v57 }
 0xc72   :  { %v1495_v49 = vpop.xlane.xlu1 %1494 }
 0xc73   :  { %v1504_v50 = vadd.f32 1e-12, %v1500_v40  ;;  %v1501_v9 = vmul.f32 0.0078125, %v1495_v49 }
 0xc75   :  { %3920 = vrsqrt.f32 %v1504_v50  ;;  %v1505_v7 = vadd.f32 1e-12, %v1501_v9 }
 0xc77   :  { %3922 = vrsqrt.f32 %v1505_v7 }
 0xc78   :  { %v1497_v31 = vpop.xlane.xlu0 %1496 }
 0xc79   :  { %v1502_v51 = vmul.f32 0.0078125, %v1497_v31 }
 0xc7a   :  { %v1499_v53 = vpop.xlane.xlu1 %1498 }
 0xc7b   :  { %v1506_v33 = vadd.f32 1e-12, %v1502_v51  ;;  %v1503_v54 = vmul.f32 0.0078125, %v1499_v53 }
 0xc7d   :  { %3924 = vrsqrt.f32 %v1506_v33  ;;  %v1507_v55 = vadd.f32 1e-12, %v1503_v54 }
 0xc7f   :  { %v3921_v52 = vpop.eup %3920  ;;  %3926 = vrsqrt.f32 %v1507_v55 }
 0xc80   :  { %v1512_v58 = vmul.f32 %v3921_v52, %v4563_v21 }
 0xc81   :  { %v3923_v43 = vpop.eup %3922 }
 0xc82   :  { %v1522_v45 = vmul.f32 %v3159_v56, %v1512_v58  ;;  %v1513_v60 = vmul.f32 %v3923_v43, %v4565_v23  ;;  %v4696_v43 = vld [vmem:[%s5031_s1] sm:$0xff] }
 0xc84   :  { %v1523_v38 = vmul.f32 %v3159_v56, %v1513_v60  ;;  %v4647_v63 = vadd.f32 %v3160_v0, %v1522_v45 }
 0xc86   :  { %v4649_v12 = vadd.f32 %v3160_v0, %v1523_v38 }
 0xc87   :  { %v3925_v4 = vpop.eup %3924 }
 0xc88   :  { %v1569_v5 = vpack.c.bf16 %v4649_v12, %v4647_v63  ;;  %v1514_v16 = vmul.f32 %v3925_v4, %v4571_v29  ;;  %v4709_v4 = vld [vmem:[%s5031_s1 + $0x10] sm:$0xff] }
 0xc89   :  { %v3927_v18 = vpop.eup %3926 }
 0xc8a   :  { %1750 = vmatmul.mubr.bf16.vlgmr.msra.gmra.mrb[20].mxu1 %v1569_v5  ;;  %3590 = vmatprep.mubr.bf16.mxu0 %v1569_v5  ;;  %v1515_v21 = vmul.f32 %v3927_v18, %v4573_v32  ;;  %v1524_v22 = vmul.f32 %v3159_v56, %v1514_v16  ;;  %v4716_v18 = vld [vmem:[%s5031_s1 + $0x18] sm:$0xff] }
 0xc8b   :  { %1759 = vmatprep.mubr.bf16.mxu1 %v3996_v39 }
 0xc8c   :  { %v1525_v23 = vmul.f32 %v3159_v56, %v1515_v21  ;;  %v4656_v24 = vadd.f32 %v3160_v0, %v1524_v22 }
 0xc8e   :  { %v4658_v25 = vadd.f32 %v3160_v0, %v1525_v23  ;;  %v4703_v0 = vld [vmem:[%s5031_s1 + $0x8] sm:$0xff] }
 0xc90   :  { %v1570_v26 = vpack.c.bf16 %v4658_v25, %v4656_v24 }
 0xc92   :  { %1760 = vmatmul.mubr.bf16.gmra.mrb[24].mxu1 %v1570_v26  ;;  %3591 = vmatmul.mubr.bf16.vlgmr.msra.gmra.mrb[28].mxu0 %v1570_v26 }
 0xd5d   :  { %v1751_v29 = vpop.f32.mrb[20].mxu1 }
 0xd5e   :  { %v1753_v32 = vpop.f32.mrb[21].mxu1  ;;  %v1752_v8 = vadd.f32 %v1751_v29, %v1577_v28 }
 0xd5f   :  { %v1755_v2 = vpop.f32.mrb[22].mxu1  ;;  %v1754_v36 = vadd.f32 %v1753_v32, %v1581_v30 }
 0xd60   :  { %v1756_v34 = vadd.f32 %v1755_v2, %v1577_v28  ;;  %v1757_v35 = vpop.f32.mrb[23].mxu1 }
 0xd61   :  { %v1758_v37 = vadd.f32 %v1757_v35, %v1581_v30 }
 0xd62   :  { %v4667_v59 = vpack.c.bf16 %v1756_v34, %v1752_v8 }
 0xd63   :  { %v4669_v62 = vpack.c.bf16 %v1758_v37, %v1754_v36 }
 0xd64   :  { %3598 = vmatprep.mubr.msk.bf16.mxu1 %vm438_vm0, %v4667_v59 }
 0xd65   :  { %v1761_v61 = vpop.f32.mrb[24].mxu1  ;;  %v3592_v1 = vpop.f32.mrb[28].mxu0  ;;  %3682 = vmatprep.subr.msk.bf16.mxu1 %vm438_vm0, %v4669_v62  ;;  %v1849_v20 = vsel %vm438_vm0, %v4669_v62, 0 }
 0xd66   :  { %v1763_v6 = vpop.f32.mrb[25].mxu1  ;;  %v1804_v41 = vpop.f32.mrb[29].mxu0  ;;  %3595 = vmatpush3.bf16.xpose.msra.mxu1 %v1849_v20  ;;  %v1762_v42 = vadd.f32 %v1761_v61, %v1577_v28  ;;  %v1813_v44 = vadd.f32 %v3592_v1, %v1585_v13 }
 0xd67   :  { %v1765_v10 = vpop.f32.mrb[26].mxu1  ;;  %v3593_v11 = vpop.f32.mrb[30].mxu0  ;;  %v1764_v19 = vadd.f32 %v1763_v6, %v1581_v30  ;;  %v1805_v48 = vadd.f32 %v1804_v41, %v1585_v13 }
 0xd68   :  { %v1766_v3 = vadd.f32 %v1765_v10, %v1577_v28  ;;  %v1816_v46 = vadd.f32 %v3593_v11, %v1585_v13  ;;  %v1767_v47 = vpop.f32.mrb[27].mxu1  ;;  %v1807_v14 = vpop.f32.mrb[31].mxu0 }
 0xd69   :  { %v1768_v57 = vadd.f32 %v1767_v47, %v1581_v30  ;;  %v1808_v40 = vadd.f32 %v1807_v14, %v1585_v13 }
 0xd6a   :  { %v4679_v49 = vpack.c.bf16 %v1766_v3, %v1762_v42  ;;  %v4681_v50 = vpack.c.bf16 %v1816_v46, %v1813_v44 }
 0xd6b   :  { %v1823_v9 = vpack.c.bf16 %v1768_v57, %v1764_v19  ;;  %v4683_v7 = vpack.c.bf16 %v1808_v40, %v1805_v48 }
 0xd6d   :  { %3683 = vmatprep.subr.msk.bf16.mxu1 %vm438_vm0, %v1823_v9  ;;  %v1852_v31 = vsel %vm438_vm0, %v1823_v9, 0 }
 0xd6e   :  { %3597 = vmatpush3.bf16.xpose.msra.mxu1 %v1852_v31 }
 0xd6f   :  { %3602 = vmatprep.subr.bf16.mxu1 %v4683_v7 }
 0xd75   :  { %3599 = vmatmul.mubr.msk.bf16.vlgmr.msra.gmra.mrb[28].mxu1 %vm438_vm0, %v4679_v49 }
 0xd76   :  { %3603 = vmatpush3.bf16.msra.mxu1 %v4683_v7 }
 0xd77   :  { %3604 = vmatprep.subr.bf16.mxu1 %v4681_v50 }
 0xd7a   :  { %3605 = vmatpush3.bf16.msra.mxu1 %v4681_v50 }
 0xe48   :  { %v3600_v51 = vpop.f32.mrb[28].mxu1 }
 0xe49   :  { %v1888_v53 = vpop.f32.mrb[29].mxu1  ;;  %v1905_v33 = vmul.f32 0.125, %v3600_v51 }
 0xe4a   :  { %v1903_v54 = vmul.f32 0.125, %v1888_v53  ;;  %v3601_v55 = vpop.f32.mrb[30].mxu1 }
 0xe4b   :  { %v1891_v52 = vpop.f32.mrb[31].mxu1  ;;  %v1906_v56 = vmul.f32 0.125, %v3601_v55  ;;  %v1909_v5 = vadd.f32 %v4709_v4, %v1905_v33 }
 0xe4c   :  { %v1904_v58 = vmul.f32 0.125, %v1891_v52  ;;  %v1907_v45 = vadd.f32 %v4696_v43, %v1903_v54 }
 0xe4d   :  { %v1910_v21 = vadd.f32 %v4716_v18, %v1906_v56  ;;  %v1917_v22 = vsel %vm508_vm1, %v1909_v5, -inf }
 0xe4e   :  { %v1911_v60 = vsel %vm508_vm1, %v1907_v45, -inf  ;;  %v1908_v38 = vadd.f32 %v4703_v0, %v1904_v58 }
 0xe4f   :  { %1912 = vmax.xlane.f32.xlu0 %v1911_v60  ;;  %v1920_v23 = vsel %vm508_vm1, %v1910_v21, -inf }
 0xe50   :  { %v1914_v16 = vsel %vm508_vm1, %v1908_v38, -inf }
 0xe51   :  { %1915 = vmax.xlane.f32.xlu1 %v1914_v16 }
 0xe53   :  { %1918 = vmax.xlane.f32.xlu0 %v1917_v22 }
 0xe55   :  { %1921 = vmax.xlane.f32.xlu1 %v1920_v23 }
 0xedc   :  { %v1913_v26 = vpop.xlane.xlu0 %1912 }
 0xedd   :  { %v1923_v27 = vsub.f32 %v1907_v45, %v1913_v26 }
 0xede   :  { %v1916_v28 = vpop.xlane.xlu1 %1915 }
 0xedf   :  { %v1924_v29 = vsub.f32 %v1908_v38, %v1916_v28  ;;  %v1927_v8 = vmul.f32 1.442695, %v1923_v27 }
 0xee0   :  { %v1919_v30 = vpop.xlane.xlu0 %1918 }
 0xee1   :  { %v1929_v32 = vmul.f32 1.442695, %v1924_v29  ;;  %v1925_v2 = vsub.f32 %v1909_v5, %v1919_v30 }
 0xee2   :  { %v1922_v34 = vpop.xlane.xlu1 %1921 }
 0xee3   :  { %3928 = vpow2.f32 %v1929_v32  ;;  %v1931_v35 = vmul.f32 1.442695, %v1925_v2  ;;  %v1926_v36 = vsub.f32 %v1910_v21, %v1922_v34 }
 0xee5   :  { %3930 = vpow2.f32 %v1931_v35  ;;  %v1933_v37 = vmul.f32 1.442695, %v1926_v36 }
 0xee6   :  { %3932 = vpow2.f32 %v1927_v8 }
 0xee7   :  { %3934 = vpow2.f32 %v1933_v37 }
 0xeed   :  { %v3929_v13 = vpop.eup %3928 }
 0xeee   :  { %v1938_v61 = vsel %vm508_vm1, %v3929_v13, 0.0 }
 0xeef   :  { %v3931_v1 = vpop.eup %3930  ;;  %1939 = vadd.xlane.f32.xlu1 %v1938_v61 }
 0xef0   :  { %v3933_v20 = vpop.eup %3932  ;;  %v1941_v6 = vsel %vm508_vm1, %v3931_v1, 0.0 }
 0xef1   :  { %v3935_v41 = vpop.eup %3934  ;;  %1942 = vadd.xlane.f32.xlu0 %v1941_v6  ;;  %v1935_v11 = vsel %vm508_vm1, %v3933_v20, 0.0 }
 0xef2   :  { %v1944_v10 = vsel %vm508_vm1, %v3935_v41, 0.0 }
 0xef3   :  { %1945 = vadd.xlane.f32.xlu1 %v1944_v10 }
 0xef5   :  { %1936 = vadd.xlane.f32.xlu0 %v1935_v11 }
 0xf04   :  { %2024 = vrot.lane.b32.xlu1 %v1823_v9, %s3997_s28 }
 0xf08   :  { %2016 = vrot.lane.b32.xlu1 %v4667_v59, %s3997_s28 }
 0xf0b   :  { %2022 = vrot.lane.b32.xlu0 %v4669_v62, %s3997_s28 }
 0xf0c   :  { %2018 = vrot.lane.b32.xlu1 %v4679_v49, %s3997_s28 }
 0xf7c   :  { %v1940_v42 = vpop.xlane.xlu1 %1939 }
 0xf7d   :  { %3936 = vrcp.f32 %v1940_v42 }
 0xf7e   :  { %v1943_v44 = vpop.xlane.xlu0 %1942 }
 0xf80   :  { %v1946_v3 = vpop.xlane.xlu1 %1945 }
 0xf81   :  { %3938 = vrcp.f32 %v1946_v3 }
 0xf82   :  { %3940 = vrcp.f32 %v1943_v44  ;;  %v1937_v46 = vpop.xlane.xlu0 %1936 }
 0xf83   :  { %3942 = vrcp.f32 %v1937_v46 }
 0xf84   :  { %v2025_v62 = vpop.permute.xlu1 %2024 }
 0xf85   :  { %v2036_v54 = vsel %vm438_vm0, %v2025_v62, 0 }
 0xf86   :  { %v2023_v47 = vpop.permute.xlu0 %2022 }
 0xf87   :  { %3684 = vmatprep.subr.msk.bf16.mxu1 %vm438_vm0, %v2023_v47  ;;  %v3937_v14 = vpop.eup %3936  ;;  %v2033_v53 = vsel %vm438_vm0, %v2023_v47, 0 }
 0xf88   :  { %v1952_v9 = vmul.f32 %v3937_v14, %v3929_v13  ;;  %v2017_v33 = vpop.permute.xlu1 %2016 }
 0xf8b   :  { %v3939_v19 = vpop.eup %3938 }
 0xf8c   :  { %v3941_v59 = vpop.eup %3940  ;;  %v1954_v57 = vmul.f32 %v3939_v19, %v3935_v41  ;;  %v2019_v55 = vpop.permute.xlu1 %2018 }
 0xf8d   :  { %v3943_v48 = vpop.eup %3942  ;;  %v1953_v49 = vmul.f32 %v3941_v59, %v3931_v1 }
 0xf8e   :  { %v1951_v40 = vmul.f32 %v3943_v48, %v3933_v20 }
 0xf8f   :  { %v1956_v51 = vpack.c.bf16 %v1954_v57, %v1953_v49 }
 0xf90   :  { %v1955_v31 = vpack.c.bf16 %v1952_v9, %v1951_v40  ;;  %v3800_v9 = vld [vmem:[%s5032_s6 + $0x60] sm:$0xff]  }
 0xf92   :  { %3606 = vmatprep.mubr.msk.bf16.mxu1 %vm508_vm1, %v1955_v31 }
 0xf93   :  { %3607 = vmatmul.mubr.msk.bf16.vlgmr.msra.gmra.mrb[32].mxu1 %vm508_vm1, %v1956_v51 }
 0xf94   :  { %3611 = vmatpush3.bf16.xpose.msra.mxu1 %v2033_v53  ;;  %3614 = vmatprep.mubr.msk.bf16.mxu1 %vm438_vm0, %v2017_v33 }
 0xf95   :  { %3685 = vmatprep.subr.msk.bf16.mxu1 %vm438_vm0, %v2025_v62 }
 0xf9c   :  { %3613 = vmatpush3.bf16.xpose.msra.mxu1 %v2036_v54 }
 0xfa3   :  { %3615 = vmatmul.mubr.msk.bf16.vlgmr.msra.gmra.mrb[36].mxu1 %vm438_vm0, %v2019_v55 }
 0xfa4   :  { %2592 = vmatprep.mubr.bf16.mxu1 %v3996_v39 }
0x1066   :  { %v4741_v52 = vpop.f32.mrb[32].mxu1 }
0x1067   :  { %v4743_v56 = vpop.f32.mrb[33].mxu1 }
0x1068   :  { %v4745_v58 = vpop.f32.mrb[34].mxu1 }
0x1069   :  { %v2013_v45 = vpack.c.bf16 %v4745_v58, %v4741_v52  ;;  %v4749_v60 = vpop.f32.mrb[35].mxu1 }
0x106a   :  { %v2012_v38 = vpack.c.bf16 %v4749_v60, %v4743_v56  ;;  %v3255_v56 = vld [vmem:[%s5033_s7 + $0x1] ss:$0 sm:$0xff] }
0x1076   :  { %v3616_v5 = vpop.f32.mrb[36].mxu1 }
0x1077   :  { %v2072_v16 = vpop.f32.mrb[37].mxu1  ;;  %v2089_v21 = vmul.f32 0.125, %v3616_v5 }
0x1078   :  { %v2087_v22 = vmul.f32 0.125, %v2072_v16  ;;  %v3617_v23 = vpop.f32.mrb[38].mxu1 }
0x1079   :  { %v2075_v26 = vpop.f32.mrb[39].mxu1  ;;  %v2090_v29 = vmul.f32 0.125, %v3617_v23  ;;  %v2093_v2 = vadd.f32 %v4709_v4, %v2089_v21  ;;  %v3801_v21 = vld [vmem:[%s5032_s6 + $0x68] sm:$0xff]   ;;  %v3803_v23 = vld [vmem:[%s5032_s6 + $0x78] sm:$0xff]  }
0x107a   :  { %v2088_v27 = vmul.f32 0.125, %v2075_v26  ;;  %v2091_v28 = vadd.f32 %v4696_v43, %v2087_v22  ;;  %v3802_v22 = vld [vmem:[%s5032_s6 + $0x70] sm:$0xff]   ;;  %v3804_v26 = vld [vmem:[%s5032_s6 + $0x40] sm:$0xff]  }
0x107b   :  { %v2101_v34 = vsel %vm508_vm1, %v2093_v2, -inf  ;;  %v2094_v35 = vadd.f32 %v4716_v18, %v2090_v29 }
0x107c   :  { %v2095_v30 = vsel %vm508_vm1, %v2091_v28, -inf  ;;  %v2092_v32 = vadd.f32 %v4703_v0, %v2088_v27 }
0x107d   :  { %2096 = vmax.xlane.f32.xlu0 %v2095_v30  ;;  %v2104_v36 = vsel %vm508_vm1, %v2094_v35, -inf }
0x107e   :  { %v2098_v8 = vsel %vm508_vm1, %v2092_v32, -inf }
0x107f   :  { %2099 = vmax.xlane.f32.xlu1 %v2098_v8  ;;  %v3805_v8 = vld [vmem:[%s5032_s6 + $0x48] sm:$0xff]  }
0x1081   :  { %2102 = vmax.xlane.f32.xlu0 %v2101_v34  ;;  %v3806_v34 = vld [vmem:[%s5032_s6 + $0x50] sm:$0xff]  }
0x1085   :  { %2105 = vmax.xlane.f32.xlu0 %v2104_v36 }
0x110a   :  { %v2097_v43 = vpop.xlane.xlu0 %2096 }
0x110b   :  { %v2107_v37 = vsub.f32 %v2091_v28, %v2097_v43 }
0x110c   :  { %v2100_v13 = vpop.xlane.xlu1 %2099 }
0x110d   :  { %v2111_v0 = vmul.f32 1.442695, %v2107_v37  ;;  %v2108_v20 = vsub.f32 %v2092_v32, %v2100_v13 }
0x110e   :  { %v2103_v61 = vpop.xlane.xlu0 %2102 }
0x110f   :  { %v2109_v1 = vsub.f32 %v2093_v2, %v2103_v61  ;;  %v2113_v10 = vmul.f32 1.442695, %v2108_v20 }
0x1111   :  { %v2115_v4 = vmul.f32 1.442695, %v2109_v1 }
0x1112   :  { %v2106_v6 = vpop.xlane.xlu0 %2105 }
0x1113   :  { %3944 = vpow2.f32 %v2115_v4  ;;  %v2110_v41 = vsub.f32 %v2094_v35, %v2106_v6  ;;  %v3807_v35 = vld [vmem:[%s5032_s6 + $0x58] sm:$0xff]   ;;  %v3810_v4 = vld [vmem:[%s5034_s10 + $0x84] ss:$8 sps:$4 sm:$0xff]  }
0x1114   :  { %3946 = vpow2.f32 %v2111_v0  ;;  %2560 = vmatprep.subr.bf16.mxu1 %v3810_v4 }
0x1115   :  { %v2117_v11 = vmul.f32 1.442695, %v2110_v41 }
0x1117   :  { %3948 = vpow2.f32 %v2117_v11 }
0x1118   :  { %3950 = vpow2.f32 %v2113_v10 }
0x111d   :  { %v3945_v18 = vpop.eup %3944 }
0x111e   :  { %v2125_v42 = vsel %vm508_vm1, %v3945_v18, 0.0  ;;  %v3947_v44 = vpop.eup %3946 }
0x111f   :  { %2126 = vadd.xlane.f32.xlu0 %v2125_v42  ;;  %v2119_v46 = vsel %vm508_vm1, %v3947_v44, 0.0 }
0x1121   :  { %v3949_v3 = vpop.eup %3948 }
0x1122   :  { %v2128_v47 = vsel %vm508_vm1, %v3949_v3, 0.0  ;;  %v3951_v14 = vpop.eup %3950 }
0x1123   :  { %2120 = vadd.xlane.f32.xlu0 %v2119_v46  ;;  %2129 = vadd.xlane.f32.xlu1 %v2128_v47  ;;  %v2122_v19 = vsel %vm508_vm1, %v3951_v14, 0.0 }
0x1127   :  { %2123 = vadd.xlane.f32.xlu1 %v2122_v19 }
0x1138   :  { %2145 = vrot.lane.b32.xlu1 %v4681_v50, %s3997_s28 }
0x1139   :  { %2143 = vrot.lane.b32.xlu0 %v4683_v7, %s3997_s28 }
0x11ac   :  { %v2127_v59 = vpop.xlane.xlu0 %2126 }
0x11b0   :  { %v2121_v48 = vpop.xlane.xlu0 %2120  ;;  %v2130_v57 = vpop.xlane.xlu1 %2129 }
0x11b1   :  { %3952 = vrcp.f32 %v2130_v57  ;;  %v3816_v57 = vld [vmem:[%s5034_s10 + $0xa4] ss:$8 sps:$4 sm:$0xff]  }
0x11b2   :  { %3954 = vrcp.f32 %v2121_v48 }
0x11b3   :  { %3956 = vrcp.f32 %v2127_v59 }
0x11b4   :  { %v2144_v62 = vpop.permute.xlu0 %2143  ;;  %v2124_v40 = vpop.xlane.xlu1 %2123 }
0x11b5   :  { %3958 = vrcp.f32 %v2124_v40  ;;  %3618 = vmatprep.subr.bf16.mxu0 %v2144_v62  ;;  %v3819_v40 = vld [vmem:[%s5034_s10 + $0xb4] ss:$8 sps:$4 sm:$0xff]  }
0x11b6   :  { %3619 = vmatpush3.bf16.msra.mxu0 %v2144_v62  ;;  %v3814_v62 = vld [vmem:[%s5034_s10 + $0xa0] ss:$8 sps:$4 sm:$0xff]  }
0x11b8   :  { %v2146_v49 = vpop.permute.xlu1 %2145 }
0x11b9   :  { %3620 = vmatprep.subr.bf16.mxu0 %v2146_v49 }
0x11ba   :  { %3621 = vmatpush3.bf16.msra.mxu0 %v2146_v49  ;;  %v3822_v49 = vld [vmem:[%s5034_s10 + $0xc4] ss:$8 sps:$4 sm:$0xff]  }
0x11bb   :  { %3626 = vmatprep.subr.bf16.mxu0 %v3800_v9  ;;  %v3953_v50 = vpop.eup %3952 }
0x11bc   :  { %v3955_v7 = vpop.eup %3954  ;;  %v2138_v53 = vmul.f32 %v3953_v50, %v3949_v3  ;;  %v3820_v50 = vld [vmem:[%s5034_s10 + $0xc0] ss:$8 sps:$4 sm:$0xff]  }
0x11bd   :  { %v3957_v31 = vpop.eup %3956  ;;  %v2135_v33 = vmul.f32 %v3955_v7, %v3947_v44  ;;  %v3825_v7 = vld [vmem:[%s5034_s10 + $0xd4] ss:$8 sps:$4 sm:$0xff]  }
0x11be   :  { %v2137_v55 = vmul.f32 %v3957_v31, %v3945_v18  ;;  %v3823_v31 = vld [vmem:[%s5034_s10 + $0xd0] ss:$8 sps:$4 sm:$0xff]  }
0x11bf   :  { %v3959_v51 = vpop.eup %3958 }
0x11c0   :  { %v2136_v54 = vmul.f32 %v3959_v51, %v3951_v14  ;;  %v2140_v16 = vpack.c.bf16 %v2138_v53, %v2137_v55  ;;  %v3828_v51 = vld [vmem:[%s5034_s10 + $0xe4] ss:$8 sps:$4 sm:$0xff]   ;;  %v3826_v53 = vld [vmem:[%s5034_s10 + $0xe0] ss:$8 sps:$4 sm:$0xff]  }
0x11c2   :  { %v2139_v5 = vpack.c.bf16 %v2136_v54, %v2135_v33  ;;  %v3831_v33 = vld [vmem:[%s5034_s10 + $0xf4] ss:$8 sps:$4 sm:$0xff]   ;;  %v3829_v54 = vld [vmem:[%s5034_s10 + $0xf0] ss:$8 sps:$4 sm:$0xff]  }
0x11c4   :  { %3622 = vmatprep.mubr.msk.bf16.mxu0 %vm508_vm1, %v2139_v5 }
0x11c5   :  { %3623 = vmatmul.mubr.msk.bf16.vlgmr.msra.gmra.mrb[32].mxu0 %vm508_vm1, %v2140_v16 }
0x11c6   :  { %3627 = vmatpush3.bf16.msra.mxu0 %v3800_v9  ;;  %v3817_v9 = vld [vmem:[%s5034_s10 + $0xb0] ss:$8 sps:$4 sm:$0xff]  }
0x11c7   :  { %3628 = vmatprep.subr.bf16.mxu0 %v3801_v21 }
0x11ca   :  { %3629 = vmatpush3.bf16.msra.mxu0 %v3801_v21 }
0x11cb   :  { %3630 = vmatprep.subr.bf16.mxu0 %v3802_v22 }
0x11ce   :  { %3631 = vmatpush3.bf16.msra.mxu0 %v3802_v22 }
0x11cf   :  { %3632 = vmatprep.subr.bf16.mxu0 %v3803_v23 }
0x11d2   :  { %3633 = vmatpush3.bf16.msra.mxu0 %v3803_v23 }
0x11d3   :  { %3638 = vmatprep.subr.bf16.mxu0 %v3804_v26 }
0x1298   :  { %v3624_v27 = vpop.f32.mrb[32].mxu0 }
0x1299   :  { %v2189_v28 = vpop.f32.mrb[33].mxu0 }
0x129a   :  { %v3625_v29 = vpop.f32.mrb[34].mxu0 }
0x129b   :  { %v2205_v30 = vpack.c.bf16 %v3625_v29, %v3624_v27  ;;  %v2192_v32 = vpop.f32.mrb[35].mxu0 }
0x129c   :  { %v2204_v2 = vpack.c.bf16 %v2192_v32, %v2189_v28 }
0x129e   :  { %3634 = vmatprep.mubr.msk.bf16.mxu0 %vm438_vm0, %v2204_v2 }
0x129f   :  { %3635 = vmatmul.mubr.msk.bf16.vlgmr.msra.gmra.mrb[36].mxu0 %vm438_vm0, %v2205_v30 }
0x12a0   :  { %3639 = vmatpush3.bf16.msra.mxu0 %v3804_v26  ;;  %3646 = vmatprep.mubr.msk.bf16.mxu0 %vm438_vm0, %v2012_v38 }
0x12a1   :  { %3640 = vmatprep.subr.bf16.mxu0 %v3805_v8 }
0x12a4   :  { %3641 = vmatpush3.bf16.msra.mxu0 %v3805_v8  ;;  %v3258_v8 = vld [vmem:[%s5035_s8 + $0x1] ss:$0 sm:$0xff] }
0x12a5   :  { %3642 = vmatprep.subr.bf16.mxu0 %v3806_v34 }
0x12a8   :  { %3643 = vmatpush3.bf16.msra.mxu0 %v3806_v34 }
0x12a9   :  { %3644 = vmatprep.subr.bf16.mxu0 %v3807_v35 }
0x12ac   :  { %3645 = vmatpush3.bf16.msra.mxu0 %v3807_v35 }
0x12af   :  { %3647 = vmatmul.mubr.msk.bf16.vlgmr.msra.gmra.mrb[36].mxu0 %vm438_vm0, %v2013_v45  ;;  %v3808_v45 = vld [vmem:[%s5034_s10 + $0x80] ss:$8 sps:$4 sm:$0xff]  }
0x12b0   :  { %2561 = vmatpush1.bf16.msra.mxu1 %v3808_v45 }
0x1382   :  { %v3648_v60 = vpop.f32.mrb[36].mxu0 }
0x1383   :  { %v2349_v38 = vpop.f32.mrb[37].mxu0  ;;  %v2374_v0 = vadd.f32 %v3648_v60, %v3255_v56 }
0x1384   :  { %v2372_v36 = vadd.f32 %v3255_v56, %v2349_v38  ;;  %v3649_v43 = vpop.f32.mrb[38].mxu0  ;;  %v3259_v38 = vld [vmem:[%s5036_s9 + $0x1] ss:$0 sm:$0xff] }
0x1385   :  { %v2352_v37 = vpop.f32.mrb[39].mxu0  ;;  %v2375_v13 = vadd.f32 %v3649_v43, %v3255_v56  ;;  %v2378_v58 = vadd.f32 %v2374_v0, %v4656_v24 }
0x1386   :  { %v2373_v61 = vadd.f32 %v3255_v56, %v2352_v37  ;;  %v2376_v1 = vadd.f32 %v2372_v36, %v4647_v63  ;;  %v3813_v63 = vld [vmem:[%s5034_s10 + $0x94] ss:$8 sps:$4 sm:$0xff]  }
0x1387   :  { %v2379_v52 = vadd.f32 %v2375_v13, %v4658_v25  ;;  %2562 = vmatprep.subr.bf16.mxu1 %v3813_v63 }
0x1388   :  { %2384 = vadd.xlane.f32.xlu1 %v2376_v1  ;;  %v2377_v20 = vadd.f32 %v2373_v61, %v4649_v12  ;;  %v3811_v12 = vld [vmem:[%s5034_s10 + $0x90] ss:$8 sps:$4 sm:$0xff]  }
0x1389   :  { %2563 = vmatpush1.bf16.msra.mxu1 %v3811_v12  ;;  %v3832_v12 = vld [vmem:[%s5037_s12 + $0xc0] sm:$0xff]  }
0x138a   :  { %2386 = vadd.xlane.f32.xlu0 %v2377_v20  ;;  %2564 = vmatprep.subr.bf16.mxu1 %v3816_v57 }
0x138b   :  { %3460 = vmatprep.subr.bf16.mxu0 %v3832_v12 }
0x138c   :  { %2390 = vadd.xlane.f32.xlu1 %v2379_v52 }
0x138d   :  { %2565 = vmatpush1.bf16.msra.mxu1 %v3814_v62 }
0x138e   :  { %2388 = vadd.xlane.f32.xlu0 %v2378_v58  ;;  %2566 = vmatprep.subr.bf16.mxu1 %v3819_v40 }
0x1391   :  { %2567 = vmatpush1.bf16.msra.mxu1 %v3817_v9 }
0x1392   :  { %2568 = vmatprep.subr.bf16.mxu1 %v3822_v49 }
0x1395   :  { %2569 = vmatpush1.bf16.msra.mxu1 %v3820_v50 }
0x1396   :  { %2570 = vmatprep.subr.bf16.mxu1 %v3825_v7 }
0x1399   :  { %2571 = vmatpush1.bf16.msra.mxu1 %v3823_v31 }
0x139a   :  { %2572 = vmatprep.subr.bf16.mxu1 %v3828_v51 }
0x139d   :  { %2573 = vmatpush1.bf16.msra.mxu1 %v3826_v53 }
0x139e   :  { %2574 = vmatprep.subr.bf16.mxu1 %v3831_v33 }
0x13a1   :  { %2575 = vmatpush1.bf16.msra.mxu1 %v3829_v54 }
0x1415   :  { %v2385_v24 = vpop.xlane.xlu1 %2384 }
0x1416   :  { %v2392_v25 = vmul.f32 0.0078125, %v2385_v24  ;;  %v3833_v24 = vld [vmem:[%s5037_s12 + $0x80] sm:$0xff]  }
0x1417   :  { %v2387_v6 = vpop.xlane.xlu0 %2386  ;;  %3461 = vmatpush3.bf16.msra.mxu0 %v3833_v24 }
0x1418   :  { %v2396_v41 = vsub.f32 %v2376_v1, %v2392_v25  ;;  %v2393_v10 = vmul.f32 0.0078125, %v2387_v6  ;;  %v3835_v25 = vld [vmem:[%s5037_s12 + $0x88] sm:$0xff]   ;;  %v3836_v6 = vld [vmem:[%s5037_s12 + $0xd0] sm:$0xff]  }
0x1419   :  { %v2391_v11 = vpop.xlane.xlu1 %2390 }
0x141a   :  { %v2397_v18 = vsub.f32 %v2377_v20, %v2393_v10  ;;  %v2395_v42 = vmul.f32 0.0078125, %v2391_v11  ;;  %v2400_v44 = vmul.f32 %v2396_v41, %v2396_v41  ;;  %v3838_v10 = vld [vmem:[%s5037_s12 + $0xd8] sm:$0xff]  }
0x141b   :  { %v2389_v3 = vpop.xlane.xlu0 %2388  ;;  %v3839_v11 = vld [vmem:[%s5037_s12 + $0x98] sm:$0xff]  }
0x141c   :  { %v2399_v46 = vsub.f32 %v2379_v52, %v2395_v42  ;;  %v2394_v47 = vmul.f32 0.0078125, %v2389_v3  ;;  %2404 = vadd.xlane.f32.xlu0 %v2400_v44  ;;  %v2401_v14 = vmul.f32 %v2397_v18, %v2397_v18  ;;  %v3841_v42 = vld [vmem:[%s5037_s12 + $0xa0] sm:$0xff]   ;;  %v3842_v44 = vld [vmem:[%s5037_s12 + $0xe8] sm:$0xff]  }
0x141d   :  { %v3843_v3 = vld [vmem:[%s5037_s12 + $0xa8] sm:$0xff]  }
0x141e   :  { %v2398_v19 = vsub.f32 %v2378_v58, %v2394_v47  ;;  %2406 = vadd.xlane.f32.xlu1 %v2401_v14  ;;  %v2403_v59 = vmul.f32 %v2399_v46, %v2399_v46  ;;  %v3845_v47 = vld [vmem:[%s5037_s12 + $0xb0] sm:$0xff]   ;;  %v3846_v14 = vld [vmem:[%s5037_s12 + $0xf8] sm:$0xff]  }
0x1420   :  { %v2402_v48 = vmul.f32 %v2398_v19, %v2398_v19 }
0x1422   :  { %2410 = vadd.xlane.f32.xlu1 %v2403_v59  ;;  %2408 = vadd.xlane.f32.xlu0 %v2402_v48  ;;  %v3276_v59 = vld [vmem:[%s5038_s11 + $0x2] sm:$0x3] }
0x1423   :  { %v2473_v48 = vrot.slane %v3276_v59, %v4220_v15  ;;  %v2477_v57 = vrot.slane %v3276_v59, %v4226_v17 }
0x14a9   :  { %v2405_v55 = vpop.xlane.xlu0 %2404 }
0x14aa   :  { %v2412_v5 = vmul.f32 0.0078125, %v2405_v55 }
0x14ab   :  { %v2407_v16 = vpop.xlane.xlu1 %2406 }
0x14ac   :  { %v2416_v21 = vadd.f32 1e-12, %v2412_v5  ;;  %v2413_v22 = vmul.f32 0.0078125, %v2407_v16 }
0x14ae   :  { %3960 = vrsqrt.f32 %v2416_v21  ;;  %v2417_v23 = vadd.f32 1e-12, %v2413_v22 }
0x14af   :  { %v2411_v26 = vpop.xlane.xlu1 %2410  ;;  %v2409_v27 = vpop.xlane.xlu0 %2408 }
0x14b0   :  { %3962 = vrsqrt.f32 %v2417_v23  ;;  %v2415_v28 = vmul.f32 0.0078125, %v2411_v26  ;;  %v2414_v29 = vmul.f32 0.0078125, %v2409_v27 }
0x14b2   :  { %v2419_v30 = vadd.f32 1e-12, %v2415_v28  ;;  %v2418_v32 = vadd.f32 1e-12, %v2414_v29 }
0x14b4   :  { %3964 = vrsqrt.f32 %v2419_v30 }
0x14b5   :  { %3966 = vrsqrt.f32 %v2418_v32 }
0x14b8   :  { %v3961_v2 = vpop.eup %3960 }
0x14b9   :  { %v2424_v34 = vmul.f32 %v3961_v2, %v2396_v41  ;;  %v3837_v41 = vld [vmem:[%s5037_s12 + $0x90] sm:$0xff]  }
0x14ba   :  { %v3963_v35 = vpop.eup %3962 }
0x14bb   :  { %v2425_v56 = vmul.f32 %v3963_v35, %v2397_v18  ;;  %v2434_v60 = vmul.f32 %v3258_v8, %v2424_v34  ;;  %v3840_v18 = vld [vmem:[%s5037_s12 + $0xe0] sm:$0xff]  }
0x14bd   :  { %v2435_v36 = vmul.f32 %v3258_v8, %v2425_v56  ;;  %v4866_v13 = vadd.f32 %v3259_v38, %v2434_v60 }
0x14be   :  { %v3965_v43 = vpop.eup %3964 }
0x14bf   :  { %v3967_v37 = vpop.eup %3966  ;;  %v4868_v61 = vadd.f32 %v3259_v38, %v2435_v36  ;;  %v2427_v1 = vmul.f32 %v3965_v43, %v2399_v46  ;;  %v3844_v46 = vld [vmem:[%s5037_s12 + $0xf0] sm:$0xff]  }
0x14c0   :  { %v2426_v0 = vmul.f32 %v3967_v37, %v2398_v19  ;;  %v3847_v19 = vld [vmem:[%s5037_s12 + $0xb8] sm:$0xff]  }
0x14c1   :  { %v2465_v20 = vpack.c.bf16 %v4868_v61, %v4866_v13  ;;  %v2437_v52 = vmul.f32 %v3258_v8, %v2427_v1 }
0x14c2   :  { %v2436_v58 = vmul.f32 %v3258_v8, %v2426_v0 }
0x14c3   :  { %2593 = vmatmul.mubr.bf16.vlgmr.msra.gmra.mrb[40].mxu1 %v2465_v20  ;;  %v4875_v4 = vadd.f32 %v3259_v38, %v2437_v52 }
0x14c4   :  { %2602 = vmatprep.mubr.bf16.mxu1 %v3996_v39  ;;  %v4873_v45 = vadd.f32 %v3259_v38, %v2436_v58  ;;  %v3834_v39 = vld [vmem:[%s5037_s12 + $0xc8] sm:$0xff]  }
0x14c5   :  { %3462 = vmatprep.subr.bf16.mxu0 %v3834_v39 }
0x14c6   :  { %v2466_v63 = vpack.c.bf16 %v4875_v4, %v4873_v45  ;;  %3463 = vmatpush3.bf16.msra.mxu0 %v3835_v25 }
0x14c7   :  { %3464 = vmatprep.subr.bf16.mxu0 %v3836_v6 }
0x14ca   :  { %3465 = vmatpush3.bf16.msra.mxu0 %v3837_v41 }
0x14cb   :  { %2603 = vmatmul.mubr.bf16.gmra.mrb[44].mxu1 %v2466_v63  ;;  %3466 = vmatprep.subr.bf16.mxu0 %v3838_v10 }
0x14ce   :  { %3467 = vmatpush3.bf16.msra.mxu0 %v3839_v11 }
0x14cf   :  { %3468 = vmatprep.subr.bf16.mxu0 %v3840_v18 }
0x14d2   :  { %3469 = vmatpush3.bf16.msra.mxu0 %v3841_v42 }
0x14d3   :  { %3470 = vmatprep.subr.bf16.mxu0 %v3842_v44 }
0x14d6   :  { %3471 = vmatpush3.bf16.msra.mxu0 %v3843_v3 }
0x14d7   :  { %3472 = vmatprep.subr.bf16.mxu0 %v3844_v46 }
0x14da   :  { %3473 = vmatpush3.bf16.msra.mxu0 %v3845_v47 }
0x14db   :  { %3474 = vmatprep.subr.bf16.mxu0 %v3846_v14 }
0x14de   :  { %3475 = vmatpush3.bf16.msra.mxu0 %v3847_v19 }
0x1596   :  { %v2594_v62 = vpop.f32.mrb[40].mxu1 }
0x1597   :  { %v4932_v40 = vadd.f32 %v2594_v62, %v2473_v48  ;;  %v2596_v9 = vpop.f32.mrb[41].mxu1 }
0x1598   :  { %v4934_v49 = vadd.f32 %v2596_v9, %v2477_v57  ;;  %v2598_v50 = vpop.f32.mrb[42].mxu1 }
0x1599   :  { %v2621_v7 = vmul.f32 0.044715, %v4932_v40  ;;  %v4937_v31 = vadd.f32 %v2598_v50, %v2473_v48  ;;  %v2600_v51 = vpop.f32.mrb[43].mxu1  ;;  %v2613_v50 = vmul.f32 0.5, %v4932_v40 }
0x159a   :  { %v2622_v53 = vmul.f32 0.044715, %v4934_v49  ;;  %v4940_v33 = vadd.f32 %v2600_v51, %v2477_v57 }
0x159b   :  { %v2629_v15 = vmul.f32 %v2621_v7, %v4932_v40  ;;  %v2623_v17 = vmul.f32 0.044715, %v4937_v31  ;;  %v2615_v7 = vmul.f32 0.5, %v4937_v31 }
0x159c   :  { %v2630_v54 = vmul.f32 %v2622_v53, %v4934_v49  ;;  %v2624_v55 = vmul.f32 0.044715, %v4940_v33  ;;  %v2614_v53 = vmul.f32 0.5, %v4934_v49 }
0x159d   :  { %v2637_v5 = vmul.f32 %v2629_v15, %v4932_v40  ;;  %v2631_v16 = vmul.f32 %v2623_v17, %v4937_v31  ;;  %v2616_v15 = vmul.f32 0.5, %v4940_v33 }
0x159e   :  { %v2638_v21 = vmul.f32 %v2630_v54, %v4934_v49  ;;  %v2632_v22 = vmul.f32 %v2624_v55, %v4940_v33  ;;  %v2604_v23 = vpop.f32.mrb[44].mxu1 }
0x159f   :  { %v2645_v26 = vadd.f32 %v2637_v5, %v4932_v40  ;;  %v2639_v27 = vmul.f32 %v2631_v16, %v4937_v31  ;;  %v4952_v28 = vadd.f32 %v2604_v23, %v2473_v48  ;;  %v2606_v29 = vpop.f32.mrb[45].mxu1 }
0x15a0   :  { %v2640_v30 = vmul.f32 %v2632_v22, %v4940_v33  ;;  %v4955_v32 = vadd.f32 %v2606_v29, %v2477_v57  ;;  %v2608_v2 = vpop.f32.mrb[46].mxu1  ;;  %v2646_v8 = vadd.f32 %v2638_v21, %v4934_v49 }
0x15a1   :  { %v2653_v34 = vmul.f32 0.7978846, %v2645_v26  ;;  %v2647_v35 = vadd.f32 %v2639_v27, %v4937_v31  ;;  %v2625_v56 = vmul.f32 0.044715, %v4952_v28  ;;  %v2609_v60 = vadd.f32 %v2608_v2, %v2473_v48  ;;  %v2610_v38 = vpop.f32.mrb[47].mxu1 }
0x15a2   :  { %v2626_v36 = vmul.f32 0.044715, %v4955_v32  ;;  %v2611_v43 = vadd.f32 %v2610_v38, %v2477_v57  ;;  %v2648_v37 = vadd.f32 %v2640_v30, %v4940_v33  ;;  %v2654_v1 = vmul.f32 0.7978846, %v2646_v8 }
0x15a3   :  { %3968 = vtanh.f32 %v2653_v34  ;;  %v2655_v0 = vmul.f32 0.7978846, %v2647_v35  ;;  %v2633_v20 = vmul.f32 %v2625_v56, %v4952_v28  ;;  %v2627_v52 = vmul.f32 0.044715, %v2609_v60 }
0x15a4   :  { %v2634_v58 = vmul.f32 %v2626_v36, %v4955_v32  ;;  %v2628_v63 = vmul.f32 0.044715, %v2611_v43  ;;  %v2656_v12 = vmul.f32 0.7978846, %v2648_v37  ;;  %3970 = vtanh.f32 %v2654_v1 }
0x15a5   :  { %3972 = vtanh.f32 %v2655_v0  ;;  %v2641_v24 = vmul.f32 %v2633_v20, %v4952_v28  ;;  %v2635_v39 = vmul.f32 %v2627_v52, %v2609_v60  ;;  %v2617_v31 = vmul.f32 0.5, %v4952_v28  ;;  %v3326_v20 = vld [vmem:[%s5039_s13 + $0x1] ss:$0 sm:$0xff] }
0x15a6   :  { %v2642_v25 = vmul.f32 %v2634_v58, %v4955_v32  ;;  %v2636_v6 = vmul.f32 %v2628_v63, %v2611_v43  ;;  %3974 = vtanh.f32 %v2656_v12  ;;  %v2619_v49 = vmul.f32 0.5, %v2609_v60 }
0x15a7   :  { %v2643_v41 = vmul.f32 %v2635_v39, %v2609_v60  ;;  %v2649_v10 = vadd.f32 %v2641_v24, %v4952_v28  ;;  %v2618_v33 = vmul.f32 0.5, %v4955_v32  ;;  %v2620_v8 = vmul.f32 0.5, %v2611_v43 }
0x15a8   :  { %v2644_v11 = vmul.f32 %v2636_v6, %v2611_v43  ;;  %v2650_v18 = vadd.f32 %v2642_v25, %v4955_v32 }
0x15a9   :  { %v2651_v42 = vadd.f32 %v2643_v41, %v2609_v60  ;;  %v2657_v44 = vmul.f32 0.7978846, %v2649_v10 }
0x15aa   :  { %v2652_v3 = vadd.f32 %v2644_v11, %v2611_v43  ;;  %v2658_v46 = vmul.f32 0.7978846, %v2650_v18 }
0x15ab   :  { %v2659_v47 = vmul.f32 0.7978846, %v2651_v42  ;;  %3976 = vtanh.f32 %v2657_v44 }
0x15ac   :  { %v2660_v14 = vmul.f32 0.7978846, %v2652_v3  ;;  %3978 = vtanh.f32 %v2658_v46 }
0x15ad   :  { %v3969_v19 = vpop.eup %3968  ;;  %3980 = vtanh.f32 %v2659_v47 }
0x15ae   :  { %v3971_v59 = vpop.eup %3970  ;;  %v2669_v48 = vadd.f32 1.0, %v3969_v19  ;;  %3982 = vtanh.f32 %v2660_v14 }
0x15af   :  { %v3973_v57 = vpop.eup %3972  ;;  %v2670_v62 = vadd.f32 1.0, %v3971_v59 }
0x15b0   :  { %v3975_v9 = vpop.eup %3974  ;;  %v2671_v51 = vadd.f32 1.0, %v3973_v57  ;;  %v2677_v54 = vmul.f32 %v2669_v48, %v2613_v50 }
0x15b1   :  { %v2672_v17 = vadd.f32 1.0, %v3975_v9  ;;  %v2678_v5 = vmul.f32 %v2670_v62, %v2614_v53  ;;  %v3848_v53 = vld [vmem:[%s5042_s16] sm:$0xff]  }
0x15b2   :  { %v2679_v55 = vmul.f32 %v2671_v51, %v2615_v7  ;;  %3650 = vmatprep.subr.bf16.mxu1 %v3848_v53 }
0x15b3   :  { %v2680_v16 = vmul.f32 %v2672_v17, %v2616_v15  ;;  %v3849_v15 = vld [vmem:[%s5042_s16 + $0x8] sm:$0xff]   ;;  %3651 = vmatpush3.bf16.msra.mxu1 %v3848_v53  ;;  %v3850_v17 = vld [vmem:[%s5042_s16 + $0x10] sm:$0xff]  }
0x15b4   :  { %v2718_v21 = vpack.c.bf16 %v2679_v55, %v2677_v54  ;;  %3652 = vmatprep.subr.bf16.mxu1 %v3849_v15  ;;  %v3851_v54 = vld [vmem:[%s5042_s16 + $0x18] sm:$0xff]   ;;  %v3852_v55 = vld [vmem:[%s5042_s16 + $0x20] sm:$0xff]  }
0x15b5   :  { %v3977_v22 = vpop.eup %3976  ;;  %v2719_v23 = vpack.c.bf16 %v2680_v16, %v2678_v5  ;;  %v3853_v5 = vld [vmem:[%s5042_s16 + $0x28] sm:$0xff]   ;;  %v3854_v16 = vld [vmem:[%s5042_s16 + $0x30] sm:$0xff]  }
0x15b6   :  { %v3979_v26 = vpop.eup %3978  ;;  %v2673_v27 = vadd.f32 1.0, %v3977_v22 }
0x15b7   :  { %v3981_v29 = vpop.eup %3980  ;;  %2858 = vmatprep.mubr.bf16.mxu0 %v2719_v23  ;;  %v2674_v40 = vadd.f32 1.0, %v3979_v26  ;;  %3653 = vmatpush3.bf16.msra.mxu1 %v3849_v15 }
0x15b8   :  { %v3983_v30 = vpop.eup %3982  ;;  %2859 = vmatmul.mubr.bf16.vlgmr.msra.gmra.mrb[40].mxu0 %v2718_v21  ;;  %v2675_v2 = vadd.f32 1.0, %v3981_v29  ;;  %v2681_v35 = vmul.f32 %v2673_v27, %v2617_v31  ;;  %3654 = vmatprep.subr.bf16.mxu1 %v3850_v17  ;;  %v3855_v21 = vld [vmem:[%s5042_s16 + $0x38] sm:$0xff]  }
0x15b9   :  { %v2676_v34 = vadd.f32 1.0, %v3983_v30  ;;  %v2682_v38 = vmul.f32 %v2674_v40, %v2618_v33 }
0x15ba   :  { %v2683_v56 = vmul.f32 %v2675_v2, %v2619_v49 }
0x15bb   :  { %v2684_v36 = vmul.f32 %v2676_v34, %v2620_v8  ;;  %3655 = vmatpush3.bf16.msra.mxu1 %v3850_v17 }
0x15bc   :  { %v2720_v37 = vpack.c.bf16 %v2683_v56, %v2681_v35  ;;  %3656 = vmatprep.subr.bf16.mxu1 %v3851_v54  ;;  %v3345_v35 = vld [vmem:[%s5040_s14 + $0x1] ss:$0 sm:$0xff] }
0x15bd   :  { %v2721_v1 = vpack.c.bf16 %v2684_v36, %v2682_v38 }
0x15bf   :  { %2866 = vmatprep.mubr.bf16.mxu0 %v2721_v1  ;;  %3657 = vmatpush3.bf16.msra.mxu1 %v3851_v54  ;;  %v3346_v1 = vld [vmem:[%s5041_s15 + $0x1] ss:$0 sm:$0xff] }
0x15c0   :  { %2867 = vmatmul.mubr.bf16.gmra.mrb[44].mxu0 %v2720_v37  ;;  %3658 = vmatprep.subr.bf16.mxu1 %v3852_v55 }
0x15c3   :  { %3659 = vmatpush3.bf16.msra.mxu1 %v3852_v55 }
0x15c4   :  { %3660 = vmatprep.subr.bf16.mxu1 %v3853_v5 }
0x15c7   :  { %3661 = vmatpush3.bf16.msra.mxu1 %v3853_v5 }
0x15c8   :  { %3662 = vmatprep.subr.bf16.mxu1 %v3854_v16 }
0x15cb   :  { %3663 = vmatpush3.bf16.msra.mxu1 %v3854_v16 }
0x15cc   :  { %3664 = vmatprep.subr.bf16.mxu1 %v3855_v21 }
0x15cf   :  { %3665 = vmatpush3.bf16.msra.mxu1 %v3855_v21 }
0x168b   :  { %v3476_v0 = vpop.f32.mrb[40].mxu0 }
0x168c   :  { %v3477_v28 = vpop.f32.mrb[41].mxu0 }
0x168d   :  { %v3478_v60 = vadd.f32 %v3477_v28, %v3476_v0  ;;  %v3479_v52 = vpop.f32.mrb[42].mxu0 }
0x168e   :  { %v3480_v58 = vpop.f32.mrb[43].mxu0 }
0x168f   :  { %v2861_v32 = vadd.f32 %v3478_v60, %v3326_v20  ;;  %v3481_v43 = vadd.f32 %v3480_v58, %v3479_v52 }
0x1691   :  { %v2864_v63 = vadd.f32 %v3481_v43, %v3326_v20  ;;  %v2875_v12 = vadd.f32 %v2861_v32, %v4866_v13 }
0x1693   :  { %2883 = vadd.xlane.f32.xlu0 %v2875_v12  ;;  %v3482_v24 = vpop.f32.mrb[44].mxu0  ;;  %v2876_v39 = vadd.f32 %v2864_v63, %v4868_v61 }
0x1694   :  { %v3483_v25 = vpop.f32.mrb[45].mxu0 }
0x1695   :  { %v3484_v6 = vadd.f32 %v3483_v25, %v3482_v24  ;;  %2885 = vadd.xlane.f32.xlu1 %v2876_v39  ;;  %v3485_v41 = vpop.f32.mrb[46].mxu0 }
0x1696   :  { %v3486_v10 = vpop.f32.mrb[47].mxu0 }
0x1697   :  { %v2869_v11 = vadd.f32 %v3484_v6, %v3326_v20  ;;  %v3487_v18 = vadd.f32 %v3486_v10, %v3485_v41  ;;  %v3347_v6 = vld [vmem:[%s5043_s17] ss:$0 sm:$0xff] }
0x1699   :  { %v2872_v42 = vadd.f32 %v3487_v18, %v3326_v20  ;;  %v2877_v44 = vadd.f32 %v2869_v11, %v4873_v45 }
0x169b   :  { %2887 = vadd.xlane.f32.xlu0 %v2877_v44  ;;  %v2878_v3 = vadd.f32 %v2872_v42, %v4875_v4 }
0x169d   :  { %2889 = vadd.xlane.f32.xlu1 %v2878_v3 }
0x1720   :  { %v2884_v46 = vpop.xlane.xlu0 %2883 }
0x1721   :  { %v2891_v13 = vmul.f32 0.0078125, %v2884_v46 }
0x1722   :  { %v2886_v47 = vpop.xlane.xlu1 %2885 }
0x1723   :  { %v2895_v14 = vsub.f32 %v2875_v12, %v2891_v13  ;;  %v2892_v19 = vmul.f32 0.0078125, %v2886_v47 }
0x1725   :  { %v2896_v61 = vsub.f32 %v2876_v39, %v2892_v19  ;;  %v2899_v59 = vmul.f32 %v2895_v14, %v2895_v14 }
0x1727   :  { %2903 = vadd.xlane.f32.xlu0 %v2899_v59  ;;  %v2900_v48 = vmul.f32 %v2896_v61, %v2896_v61 }
0x1728   :  { %v2888_v57 = vpop.xlane.xlu0 %2887 }
0x1729   :  { %v2893_v62 = vmul.f32 0.0078125, %v2888_v57  ;;  %2905 = vadd.xlane.f32.xlu1 %v2900_v48 }
0x172a   :  { %v2890_v9 = vpop.xlane.xlu1 %2889 }
0x172b   :  { %v2897_v50 = vsub.f32 %v2877_v44, %v2893_v62  ;;  %v2894_v7 = vmul.f32 0.0078125, %v2890_v9 }
0x172d   :  { %v2898_v45 = vsub.f32 %v2878_v3, %v2894_v7  ;;  %v2901_v51 = vmul.f32 %v2897_v50, %v2897_v50 }
0x172f   :  { %2907 = vadd.xlane.f32.xlu0 %v2901_v51  ;;  %v2902_v4 = vmul.f32 %v2898_v45, %v2898_v45 }
0x1731   :  { %2909 = vadd.xlane.f32.xlu1 %v2902_v4 }
0x17b4   :  { %v2904_v22 = vpop.xlane.xlu0 %2903 }
0x17b5   :  { %v2911_v23 = vmul.f32 0.0078125, %v2904_v22 }
0x17b6   :  { %v2906_v26 = vpop.xlane.xlu1 %2905 }
0x17b7   :  { %v2915_v27 = vadd.f32 1e-12, %v2911_v23  ;;  %v2912_v29 = vmul.f32 0.0078125, %v2906_v26 }
0x17b9   :  { %3984 = vrsqrt.f32 %v2915_v27  ;;  %v2916_v40 = vadd.f32 1e-12, %v2912_v29 }
0x17bb   :  { %3986 = vrsqrt.f32 %v2916_v40 }
0x17bc   :  { %v2908_v30 = vpop.xlane.xlu0 %2907 }
0x17bd   :  { %v2913_v31 = vmul.f32 0.0078125, %v2908_v30 }
0x17be   :  { %v2910_v49 = vpop.xlane.xlu1 %2909 }
0x17bf   :  { %v2917_v2 = vadd.f32 1e-12, %v2913_v31  ;;  %v2914_v33 = vmul.f32 0.0078125, %v2910_v49 }
0x17c1   :  { %3988 = vrsqrt.f32 %v2917_v2  ;;  %v2918_v8 = vadd.f32 1e-12, %v2914_v33 }
0x17c3   :  { %v3985_v34 = vpop.eup %3984  ;;  %3990 = vrsqrt.f32 %v2918_v8 }
0x17c4   :  { %v2923_v56 = vmul.f32 %v3985_v34, %v2895_v14 }
0x17c5   :  { %v3987_v38 = vpop.eup %3986 }
0x17c6   :  { %v2924_v36 = vmul.f32 %v3987_v38, %v2896_v61  ;;  %v2933_v37 = vmul.f32 %v3345_v35, %v2923_v56 }
0x17c8   :  { %v2934_v0 = vmul.f32 %v3345_v35, %v2924_v36  ;;  %v2943_v20 = vadd.f32 %v3346_v1, %v2933_v37 }
0x17ca   :  { %v2944_v28 = vadd.f32 %v3346_v1, %v2934_v0 }
0x17cb   :  { %v3989_v60 = vpop.eup %3988 }
0x17cc   :  { %v2925_v52 = vmul.f32 %v3989_v60, %v2897_v50  ;;  %v2963_v58 = vpack.c.bf16 %v2944_v28, %v2943_v20 }
0x17cd   :  { %v3991_v32 = vpop.eup %3990 }
0x17ce   :  { %v2926_v43 = vmul.f32 %v3991_v32, %v2898_v45  ;;  %3666 = vmatprep.mubr.bf16.mxu1 %v2963_v58  ;;  %v2935_v63 = vmul.f32 %v3345_v35, %v2925_v52 }
0x17d0   :  { %v2936_v12 = vmul.f32 %v3345_v35, %v2926_v43  ;;  %v2945_v24 = vadd.f32 %v3346_v1, %v2935_v63 }
0x17d2   :  { %v2946_v39 = vadd.f32 %v3346_v1, %v2936_v12 }
0x17d4   :  { %v2964_v25 = vpack.c.bf16 %v2946_v39, %v2945_v24 }
0x17d6   :  { %3667 = vmatmul.mubr.bf16.vlgmr.msra.gmra.mrb[48].mxu1 %v2964_v25 }
0x18a9   :  { %v3668_v41 = vpop.f32.mrb[48].mxu1 }
0x18aa   :  { %v3063_v10 = vadd.f32 %v3668_v41, %v3347_v6  ;;  %v3054_v11 = vpop.f32.mrb[49].mxu1 }
0x18ab   :  { %v3055_v18 = vadd.f32 %v3347_v6, %v3054_v11  ;;  %v3669_v42 = vpop.f32.mrb[50].mxu1 }
0x18ac   :  { %3071 = vst [vmem:[%s5044_s18 + $0x10] sm:$0xff] %v3063_v10  ;;  %v3066_v44 = vadd.f32 %v3669_v42, %v3347_v6  ;;  %v3057_v3 = vpop.f32.mrb[51].mxu1 }
0x18ad   :  { %3069 = vst [vmem:[%s5044_s18] sm:$0xff] %v3055_v18  ;;  %v3058_v46 = vadd.f32 %v3347_v6, %v3057_v3 }
0x18ae   :  { %3072 = vst [vmem:[%s5044_s18 + $0x18] sm:$0xff] %v3066_v44 }
0x18af   :  { %3070 = vst [vmem:[%s5044_s18 + $0x8] sm:$0xff] %v3058_v46 }

</bundles_post_ra>
